<compile_context>
chip_gen: v6e
topology: v6e:2x2x1
jax: 0.10.0
libtpu: 0.0.40
codegen_flags: <defaults>
</compile_context>

<pallas_src>
import functools
import math

import jax
import jax.numpy as jnp
from jax.experimental import pallas as pl
from jax.experimental.pallas import tpu as pltpu


def _rup(x, m):
    return ((x + m - 1) // m) * m


# ----------------------------------------------------------------------------
# Conv (im2col matmul) with fused bias + ReLU epilogue
# ----------------------------------------------------------------------------
def _conv_matmul_relu_kernel(a_ref, b_ref, bias_ref, o_ref):
    r = jnp.dot(a_ref[...], b_ref[...], preferred_element_type=jnp.float32)
    r = r + bias_ref[...]                 # (8, 1) broadcasts along lanes
    o_ref[...] = jnp.maximum(r, 0.0)


def conv_relu_pallas(x, A, bias, k, stride, oc):
    """x: (C, H, W) f32; A: (8, Kp) packed weight; bias: (8, 1). -> (oc, OH, OW)."""
    C, H, W = x.shape
    OH = (H - k) // stride + 1
    OW = (W - k) // stride + 1
    HW = OH * OW

    # im2col patches with K ordered (kh, kw, ic) to match the packed weight.
    cols = []
    for di in range(k):
        for dj in range(k):
            cols.append(x[:, di:di + stride * (OH - 1) + 1:stride,
                          dj:dj + stride * (OW - 1) + 1:stride])
    patches = jnp.stack(cols, axis=0).reshape(k * k * C, HW)

    Kp = A.shape[1]
    TN = 512
    HWp = _rup(HW, TN)
    patches = jnp.pad(patches, ((0, Kp - k * k * C), (0, HWp - HW)))

    out = pl.pallas_call(
        _conv_matmul_relu_kernel,
        out_shape=jax.ShapeDtypeStruct((8, HWp), jnp.float32),
        grid=(HWp // TN,),
        in_specs=[
            pl.BlockSpec((8, Kp), lambda n: (0, 0)),
            pl.BlockSpec((Kp, TN), lambda n: (0, n)),
            pl.BlockSpec((8, 1), lambda n: (0, 0)),
        ],
        out_specs=pl.BlockSpec((8, TN), lambda n: (0, n)),
        compiler_params=pltpu.CompilerParams(dimension_semantics=("parallel",)),
    )(A, patches, bias)
    return out[:oc, :HW].reshape(oc, OH, OW)


# ----------------------------------------------------------------------------
# MaxPool2d(3, stride=1) kernel: shifted maxima, one channel per grid step
# ----------------------------------------------------------------------------
def _maxpool3x3_s1_kernel(x_ref, o_ref):
    x = x_ref[...]                                   # (H, W)
    OH, OW = o_ref.shape
    r = jnp.maximum(jnp.maximum(x[:, 0:OW], x[:, 1:OW + 1]), x[:, 2:OW + 2])
    r = jnp.maximum(jnp.maximum(r[0:OH, :], r[1:OH + 1, :]), r[2:OH + 2, :])
    o_ref[...] = r


def maxpool3_pallas(x):
    """x: (C, H, W) -> (C, H-2, W-2)."""
    C, H, W = x.shape
    OH, OW = H - 2, W - 2
    return pl.pallas_call(
        _maxpool3x3_s1_kernel,
        out_shape=jax.ShapeDtypeStruct((C, OH, OW), jnp.float32),
        grid=(C,),
        in_specs=[pl.BlockSpec((None, H, W), lambda c: (c, 0, 0))],
        out_specs=pl.BlockSpec((None, OH, OW), lambda c: (c, 0, 0)),
        compiler_params=pltpu.CompilerParams(dimension_semantics=("parallel",)),
    )(x)


# ----------------------------------------------------------------------------
# Fused F0 -> F1 -> F2 linear chain (all with ReLU) in one kernel
# ----------------------------------------------------------------------------
def _mlp3_relu_kernel(x_ref, w0_ref, b0_ref, w1_ref, b1_ref, w2_ref, b2_ref, o_ref):
    f32 = jnp.float32
    h = jnp.maximum(jnp.dot(x_ref[...], w0_ref[...], preferred_element_type=f32)
                    + b0_ref[...], 0.0)
    h = jnp.maximum(jnp.dot(h, w1_ref[...], preferred_element_type=f32)
                    + b1_ref[...], 0.0)
    h = jnp.maximum(jnp.dot(h, w2_ref[...], preferred_element_type=f32)
                    + b2_ref[...], 0.0)
    o_ref[...] = h


def mlp3_pallas(x, w0, b0, w1, b1, w2, b2):
    return pl.pallas_call(
        _mlp3_relu_kernel,
        out_shape=jax.ShapeDtypeStruct((x.shape[0], w2.shape[1]), jnp.float32),
    )(x, w0, b0, w1, b1, w2, b2)


# ----------------------------------------------------------------------------
# Parameter construction (deterministic synthetic weights, pre-packed/padded)
# ----------------------------------------------------------------------------
def init_params(key, path_length):
    keys = jax.random.split(key, 12)
    kit = iter(keys)

    def conv_params(oc, ic, k):
        fan_in = ic * k * k
        bound = 1.0 / math.sqrt(fan_in)
        w = jax.random.uniform(next(kit), (oc, ic, k, k), jnp.float32, -bound, bound)
        b = jax.random.uniform(next(kit), (oc,), jnp.float32, -bound, bound)
        # Pack as (OC, K) with K ordered (kh, kw, ic); pad to (8, 128) once here.
        A = w.transpose(0, 2, 3, 1).reshape(oc, k * k * ic)
        A = jnp.pad(A, ((0, 8 - oc), (0, _rup(k * k * ic, 128) - k * k * ic)))
        bias = jnp.pad(b, (0, 8 - oc)).reshape(8, 1)
        return A, bias

    def linear_params(out_d, in_d, out_pad, in_pad):
        bound = 1.0 / math.sqrt(in_d)
        w = jax.random.uniform(next(kit), (out_d, in_d), jnp.float32, -bound, bound)
        b = jax.random.uniform(next(kit), (out_d,), jnp.float32, -bound, bound)
        W = jnp.pad(w.T, ((0, in_pad - in_d), (0, out_pad - out_d)))
        B = jnp.pad(b, (0, out_pad - out_d)).reshape(1, out_pad)
        return W, B

    p = {}
    p['conv1_A'], p['conv1_b'] = conv_params(3, 3, 5)   # CNN1: 3 -> 3, 5x5, s2
    p['conv2_A'], p['conv2_b'] = conv_params(3, 3, 5)   # CNN2: 3 -> 3, 5x5, s2
    p['conv3_A'], p['conv3_b'] = conv_params(1, 3, 5)   # CNN3: 3 -> 1, 5x5, s2
    p['f0_w'], p['f0_b'] = linear_params(128, 256, 128, 256)          # F0_NET
    p['f1_w'], p['f1_b'] = linear_params(64, 128, 128, 128)           # F1_NET
    p['f2_w'], p['f2_b'] = linear_params(path_length, 64, 128, 128)   # F2_NET
    return p


# ----------------------------------------------------------------------------
# Full forward pass
# ----------------------------------------------------------------------------
def lpnet_forward(params, information_embedder, *, path_length):
    x = information_embedder
    assert x.shape[0] == 1, "forward() flattens everything to (1, 256); use batch=1"
    x = x[0]                                                           # (3, H, W)
    x = conv_relu_pallas(x, params['conv1_A'], params['conv1_b'], 5, 2, 3)
    x = maxpool3_pallas(x)
    x = conv_relu_pallas(x, params['conv2_A'], params['conv2_b'], 5, 2, 3)
    x = maxpool3_pallas(x)
    x = conv_relu_pallas(x, params['conv3_A'], params['conv3_b'], 5, 2, 1)
    x = maxpool3_pallas(x)
    # prediction.view(-1, F0_DIM): F0_NET requires exactly 256 flattened features.
    assert x.size == 256, f"flattened feature dim {x.size} != F0_NET in_features 256"
    feat = x.reshape(1, 256)                         # NCHW flatten order (c, h, w)
    out = mlp3_pallas(feat, params['f0_w'], params['f0_b'],
                      params['f1_w'], params['f1_b'],
                      params['f2_w'], params['f2_b'])                  # (1, 128) padded
    return out[0, :path_length]


if __name__ == "__main__":
    PATH_LENGTH = 8          # path_length == dynamic_input_dim (output size)
    RNN_OUTPUT_DIM = 32      # constructor arg; unused by forward()

    key = jax.random.PRNGKey(0)
    k_params, k_x = jax.random.split(key)
    params = init_params(k_params, PATH_LENGTH)

    # Input spatial size is forced by the module: the flattened conv/pool output
    # must equal F0_NET's 256 in_features.
    # 177 -conv5/s2-> 87 -pool3/s1-> 85 -conv-> 41 -pool-> 39 -conv-> 18 -pool-> 16,
    # and 1 * 16 * 16 = 256.  IE_CHANNEL = 3.
    x = jax.random.normal(k_x, (1, 3, 177, 177), jnp.float32)

    fwd = jax.jit(functools.partial(lpnet_forward, path_length=PATH_LENGTH))
    out = fwd(params, x)
    jax.block_until_ready(out)
    assert out.shape == (PATH_LENGTH,) and out.dtype == jnp.float32
    print("KERNEL_OK")
</pallas_src>

<mosaic_0001>
module attributes {stable_mosaic.version = 11 : i64} {
  func.func @_conv_matmul_relu_kernel(%arg0: i32, %arg1: memref<8x128xf32, #tpu.memory_space<vmem>>, %arg2: memref<128x512xf32, #tpu.memory_space<vmem>>, %arg3: memref<8x1xf32, #tpu.memory_space<vmem>>, %arg4: memref<8x512xf32, #tpu.memory_space<vmem>>) attributes {dimension_semantics = [#tpu.dimension_semantics<parallel>], iteration_bounds = array<i64: 15>, scalar_prefetch = 0 : i64, scratch_operands = 0 : i64, tpu.core_type = #tpu.core_type<tc>, window_params = [{pipeline_mode = #tpu.pipeline_mode<synchronous>, transform_indices = @transform_0, window_bounds = array<i64: 8, 128>}, {transform_indices = @transform_1, window_bounds = array<i64: 128, 512>}, {pipeline_mode = #tpu.pipeline_mode<synchronous>, transform_indices = @transform_2, window_bounds = array<i64: 8, 1>}, {transform_indices = @transform_3, window_bounds = array<i64: 8, 512>}]} {
    %c0 = arith.constant 0 : index
    %c0_0 = arith.constant 0 : index
    %0 = vector.load %arg1[%c0, %c0_0] : memref<8x128xf32, #tpu.memory_space<vmem>>, vector<8x128xf32>
    %c0_1 = arith.constant 0 : index
    %c0_2 = arith.constant 0 : index
    %1 = vector.load %arg2[%c0_1, %c0_2] : memref<128x512xf32, #tpu.memory_space<vmem>>, vector<128x512xf32>
    %cst = arith.constant dense<0.000000e+00> : vector<8x512xf32>
    %2 = tpu.matmul %0, %1, %cst {dimension_numbers = #tpu.dot_dimension_numbers<[1], [0], [0], [1], [0, 0, 1, 1], [], []>} : vector<8x128xf32>, vector<128x512xf32>, vector<8x512xf32> -> vector<8x512xf32>
    %c0_3 = arith.constant 0 : index
    %c0_4 = arith.constant 0 : index
    %3 = vector.load %arg3[%c0_3, %c0_4] : memref<8x1xf32, #tpu.memory_space<vmem>>, vector<8x1xf32>
    %4 = vector.broadcast %3 : vector<8x1xf32> to vector<8x512xf32>
    %5 = arith.addf %2, %4 : vector<8x512xf32>
    %cst_5 = arith.constant 0.000000e+00 : f32
    %6 = vector.broadcast %cst_5 : f32 to vector<8x512xf32>
    %7 = arith.maximumf %5, %6 : vector<8x512xf32>
    %c0_6 = arith.constant 0 : index
    %c0_7 = arith.constant 0 : index
    %8 = vector.load %arg4[%c0_6, %c0_7] : memref<8x512xf32, #tpu.memory_space<vmem>>, vector<8x512xf32>
    tpu.vector_store %arg4[%c0_6, %c0_7], %7 {strides = array<i32>} : memref<8x512xf32, #tpu.memory_space<vmem>>, vector<8x512xf32>,
    return
  }
  func.func @transform_0(%arg0: i32) -> (i32, i32) {
    %c0_i32 = arith.constant 0 : i32
    %c0_i32_0 = arith.constant 0 : i32
    %c0_i32_1 = arith.constant 0 : i32
    return %c0_i32, %c0_i32_0 : i32, i32
  }
  func.func @transform_1(%arg0: i32) -> (i32, i32) {
    %c0_i32 = arith.constant 0 : i32
    %c0_i32_0 = arith.constant 0 : i32
    return %c0_i32, %arg0 : i32, i32
  }
  func.func @transform_2(%arg0: i32) -> (i32, i32) {
    %c0_i32 = arith.constant 0 : i32
    %c0_i32_0 = arith.constant 0 : i32
    %c0_i32_1 = arith.constant 0 : i32
    return %c0_i32, %c0_i32_0 : i32, i32
  }
  func.func @transform_3(%arg0: i32) -> (i32, i32) {
    %c0_i32 = arith.constant 0 : i32
    %c0_i32_0 = arith.constant 0 : i32
    return %c0_i32, %arg0 : i32, i32
  }
}

module attributes {stable_mosaic.version = 11 : i64} {
  func.func @_maxpool3x3_s1_kernel(%arg0: i32, %arg1: memref<1x87x87xf32, #tpu.memory_space<vmem>>, %arg2: memref<1x85x85xf32, #tpu.memory_space<vmem>>) attributes {dimension_semantics = [#tpu.dimension_semantics<parallel>], iteration_bounds = array<i64: 3>, scalar_prefetch = 0 : i64, scratch_operands = 0 : i64, tpu.core_type = #tpu.core_type<tc>, window_params = [{transform_indices = @transform_0, window_bounds = array<i64: 1, 87, 87>}, {transform_indices = @transform_1, window_bounds = array<i64: 1, 85, 85>}]} {
    %c0 = arith.constant 0 : index
    %c0_0 = arith.constant 0 : index
    %c0_1 = arith.constant 0 : index
    %0 = vector.load %arg1[%c0, %c0_0, %c0_1] : memref<1x87x87xf32, #tpu.memory_space<vmem>>, vector<1x87x87xf32>
    %1 = vector.shape_cast %0 : vector<1x87x87xf32> to vector<87x87xf32>
    %2 = vector.extract_strided_slice %1 {offsets = [0, 0], sizes = [87, 85], strides = [1, 1]} : vector<87x87xf32> to vector<87x85xf32>
    %3 = vector.extract_strided_slice %1 {offsets = [0, 1], sizes = [87, 85], strides = [1, 1]} : vector<87x87xf32> to vector<87x85xf32>
    %4 = arith.maximumf %2, %3 : vector<87x85xf32>
    %5 = vector.extract_strided_slice %1 {offsets = [0, 2], sizes = [87, 85], strides = [1, 1]} : vector<87x87xf32> to vector<87x85xf32>
    %6 = arith.maximumf %4, %5 : vector<87x85xf32>
    %7 = vector.extract_strided_slice %6 {offsets = [0, 0], sizes = [85, 85], strides = [1, 1]} : vector<87x85xf32> to vector<85x85xf32>
    %8 = vector.extract_strided_slice %6 {offsets = [1, 0], sizes = [85, 85], strides = [1, 1]} : vector<87x85xf32> to vector<85x85xf32>
    %9 = arith.maximumf %7, %8 : vector<85x85xf32>
    %10 = vector.extract_strided_slice %6 {offsets = [2, 0], sizes = [85, 85], strides = [1, 1]} : vector<87x85xf32> to vector<85x85xf32>
    %11 = arith.maximumf %9, %10 : vector<85x85xf32>
    %c0_2 = arith.constant 0 : index
    %c0_3 = arith.constant 0 : index
    %c0_4 = arith.constant 0 : index
    %12 = vector.load %arg2[%c0_2, %c0_3, %c0_4] : memref<1x85x85xf32, #tpu.memory_space<vmem>>, vector<1x85x85xf32>
    %13 = vector.shape_cast %12 : vector<1x85x85xf32> to vector<85x85xf32>
    %14 = vector.shape_cast %11 : vector<85x85xf32> to vector<1x85x85xf32>
    tpu.vector_store %arg2[%c0_2, %c0_3, %c0_4], %14 {strides = array<i32>} : memref<1x85x85xf32, #tpu.memory_space<vmem>>, vector<1x85x85xf32>,
    return
  }
  func.func @transform_0(%arg0: i32) -> (i32, i32, i32) {
    %c0_i32 = arith.constant 0 : i32
    %c0_i32_0 = arith.constant 0 : i32
    %c0_i32_1 = arith.constant 0 : i32
    return %arg0, %c0_i32, %c0_i32_0 : i32, i32, i32
  }
  func.func @transform_1(%arg0: i32) -> (i32, i32, i32) {
    %c0_i32 = arith.constant 0 : i32
    %c0_i32_0 = arith.constant 0 : i32
    %c0_i32_1 = arith.constant 0 : i32
    return %arg0, %c0_i32, %c0_i32_0 : i32, i32, i32
  }
}

module attributes {stable_mosaic.version = 11 : i64} {
  func.func @_conv_matmul_relu_kernel(%arg0: i32, %arg1: memref<8x128xf32, #tpu.memory_space<vmem>>, %arg2: memref<128x512xf32, #tpu.memory_space<vmem>>, %arg3: memref<8x1xf32, #tpu.memory_space<vmem>>, %arg4: memref<8x512xf32, #tpu.memory_space<vmem>>) attributes {dimension_semantics = [#tpu.dimension_semantics<parallel>], iteration_bounds = array<i64: 4>, scalar_prefetch = 0 : i64, scratch_operands = 0 : i64, tpu.core_type = #tpu.core_type<tc>, window_params = [{pipeline_mode = #tpu.pipeline_mode<synchronous>, transform_indices = @transform_0, window_bounds = array<i64: 8, 128>}, {transform_indices = @transform_1, window_bounds = array<i64: 128, 512>}, {pipeline_mode = #tpu.pipeline_mode<synchronous>, transform_indices = @transform_2, window_bounds = array<i64: 8, 1>}, {transform_indices = @transform_3, window_bounds = array<i64: 8, 512>}]} {
    %c0 = arith.constant 0 : index
    %c0_0 = arith.constant 0 : index
    %0 = vector.load %arg1[%c0, %c0_0] : memref<8x128xf32, #tpu.memory_space<vmem>>, vector<8x128xf32>
    %c0_1 = arith.constant 0 : index
    %c0_2 = arith.constant 0 : index
    %1 = vector.load %arg2[%c0_1, %c0_2] : memref<128x512xf32, #tpu.memory_space<vmem>>, vector<128x512xf32>
    %cst = arith.constant dense<0.000000e+00> : vector<8x512xf32>
    %2 = tpu.matmul %0, %1, %cst {dimension_numbers = #tpu.dot_dimension_numbers<[1], [0], [0], [1], [0, 0, 1, 1], [], []>} : vector<8x128xf32>, vector<128x512xf32>, vector<8x512xf32> -> vector<8x512xf32>
    %c0_3 = arith.constant 0 : index
    %c0_4 = arith.constant 0 : index
    %3 = vector.load %arg3[%c0_3, %c0_4] : memref<8x1xf32, #tpu.memory_space<vmem>>, vector<8x1xf32>
    %4 = vector.broadcast %3 : vector<8x1xf32> to vector<8x512xf32>
    %5 = arith.addf %2, %4 : vector<8x512xf32>
    %cst_5 = arith.constant 0.000000e+00 : f32
    %6 = vector.broadcast %cst_5 : f32 to vector<8x512xf32>
    %7 = arith.maximumf %5, %6 : vector<8x512xf32>
    %c0_6 = arith.constant 0 : index
    %c0_7 = arith.constant 0 : index
    %8 = vector.load %arg4[%c0_6, %c0_7] : memref<8x512xf32, #tpu.memory_space<vmem>>, vector<8x512xf32>
    tpu.vector_store %arg4[%c0_6, %c0_7], %7 {strides = array<i32>} : memref<8x512xf32, #tpu.memory_space<vmem>>, vector<8x512xf32>,
    return
  }
  func.func @transform_0(%arg0: i32) -> (i32, i32) {
    %c0_i32 = arith.constant 0 : i32
    %c0_i32_0 = arith.constant 0 : i32
    %c0_i32_1 = arith.constant 0 : i32
    return %c0_i32, %c0_i32_0 : i32, i32
  }
  func.func @transform_1(%arg0: i32) -> (i32, i32) {
    %c0_i32 = arith.constant 0 : i32
    %c0_i32_0 = arith.constant 0 : i32
    return %c0_i32, %arg0 : i32, i32
  }
  func.func @transform_2(%arg0: i32) -> (i32, i32) {
    %c0_i32 = arith.constant 0 : i32
    %c0_i32_0 = arith.constant 0 : i32
    %c0_i32_1 = arith.constant 0 : i32
    return %c0_i32, %c0_i32_0 : i32, i32
  }
  func.func @transform_3(%arg0: i32) -> (i32, i32) {
    %c0_i32 = arith.constant 0 : i32
    %c0_i32_0 = arith.constant 0 : i32
    return %c0_i32, %arg0 : i32, i32
  }
}

module attributes {stable_mosaic.version = 11 : i64} {
  func.func @_maxpool3x3_s1_kernel(%arg0: i32, %arg1: memref<1x41x41xf32, #tpu.memory_space<vmem>>, %arg2: memref<1x39x39xf32, #tpu.memory_space<vmem>>) attributes {dimension_semantics = [#tpu.dimension_semantics<parallel>], iteration_bounds = array<i64: 3>, scalar_prefetch = 0 : i64, scratch_operands = 0 : i64, tpu.core_type = #tpu.core_type<tc>, window_params = [{transform_indices = @transform_0, window_bounds = array<i64: 1, 41, 41>}, {transform_indices = @transform_1, window_bounds = array<i64: 1, 39, 39>}]} {
    %c0 = arith.constant 0 : index
    %c0_0 = arith.constant 0 : index
    %c0_1 = arith.constant 0 : index
    %0 = vector.load %arg1[%c0, %c0_0, %c0_1] : memref<1x41x41xf32, #tpu.memory_space<vmem>>, vector<1x41x41xf32>
    %1 = vector.shape_cast %0 : vector<1x41x41xf32> to vector<41x41xf32>
    %2 = vector.extract_strided_slice %1 {offsets = [0, 0], sizes = [41, 39], strides = [1, 1]} : vector<41x41xf32> to vector<41x39xf32>
    %3 = vector.extract_strided_slice %1 {offsets = [0, 1], sizes = [41, 39], strides = [1, 1]} : vector<41x41xf32> to vector<41x39xf32>
    %4 = arith.maximumf %2, %3 : vector<41x39xf32>
    %5 = vector.extract_strided_slice %1 {offsets = [0, 2], sizes = [41, 39], strides = [1, 1]} : vector<41x41xf32> to vector<41x39xf32>
    %6 = arith.maximumf %4, %5 : vector<41x39xf32>
    %7 = vector.extract_strided_slice %6 {offsets = [0, 0], sizes = [39, 39], strides = [1, 1]} : vector<41x39xf32> to vector<39x39xf32>
    %8 = vector.extract_strided_slice %6 {offsets = [1, 0], sizes = [39, 39], strides = [1, 1]} : vector<41x39xf32> to vector<39x39xf32>
    %9 = arith.maximumf %7, %8 : vector<39x39xf32>
    %10 = vector.extract_strided_slice %6 {offsets = [2, 0], sizes = [39, 39], strides = [1, 1]} : vector<41x39xf32> to vector<39x39xf32>
    %11 = arith.maximumf %9, %10 : vector<39x39xf32>
    %c0_2 = arith.constant 0 : index
    %c0_3 = arith.constant 0 : index
    %c0_4 = arith.constant 0 : index
    %12 = vector.load %arg2[%c0_2, %c0_3, %c0_4] : memref<1x39x39xf32, #tpu.memory_space<vmem>>, vector<1x39x39xf32>
    %13 = vector.shape_cast %12 : vector<1x39x39xf32> to vector<39x39xf32>
    %14 = vector.shape_cast %11 : vector<39x39xf32> to vector<1x39x39xf32>
    tpu.vector_store %arg2[%c0_2, %c0_3, %c0_4], %14 {strides = array<i32>} : memref<1x39x39xf32, #tpu.memory_space<vmem>>, vector<1x39x39xf32>,
    return
  }
  func.func @transform_0(%arg0: i32) -> (i32, i32, i32) {
    %c0_i32 = arith.constant 0 : i32
    %c0_i32_0 = arith.constant 0 : i32
    %c0_i32_1 = arith.constant 0 : i32
    return %arg0, %c0_i32, %c0_i32_0 : i32, i32, i32
  }
  func.func @transform_1(%arg0: i32) -> (i32, i32, i32) {
    %c0_i32 = arith.constant 0 : i32
    %c0_i32_0 = arith.constant 0 : i32
    %c0_i32_1 = arith.constant 0 : i32
    return %arg0, %c0_i32, %c0_i32_0 : i32, i32, i32
  }
}

module attributes {stable_mosaic.version = 11 : i64} {
  func.func @_conv_matmul_relu_kernel(%arg0: i32, %arg1: memref<8x128xf32, #tpu.memory_space<vmem>>, %arg2: memref<128x512xf32, #tpu.memory_space<vmem>>, %arg3: memref<8x1xf32, #tpu.memory_space<vmem>>, %arg4: memref<8x512xf32, #tpu.memory_space<vmem>>) attributes {dimension_semantics = [#tpu.dimension_semantics<parallel>], iteration_bounds = array<i64: 1>, scalar_prefetch = 0 : i64, scratch_operands = 0 : i64, tpu.core_type = #tpu.core_type<tc>, window_params = [{pipeline_mode = #tpu.pipeline_mode<synchronous>, transform_indices = @transform_0, window_bounds = array<i64: 8, 128>}, {transform_indices = @transform_1, window_bounds = array<i64: 128, 512>}, {pipeline_mode = #tpu.pipeline_mode<synchronous>, transform_indices = @transform_2, window_bounds = array<i64: 8, 1>}, {transform_indices = @transform_3, window_bounds = array<i64: 8, 512>}]} {
    %c0 = arith.constant 0 : index
    %c0_0 = arith.constant 0 : index
    %0 = vector.load %arg1[%c0, %c0_0] : memref<8x128xf32, #tpu.memory_space<vmem>>, vector<8x128xf32>
    %c0_1 = arith.constant 0 : index
    %c0_2 = arith.constant 0 : index
    %1 = vector.load %arg2[%c0_1, %c0_2] : memref<128x512xf32, #tpu.memory_space<vmem>>, vector<128x512xf32>
    %cst = arith.constant dense<0.000000e+00> : vector<8x512xf32>
    %2 = tpu.matmul %0, %1, %cst {dimension_numbers = #tpu.dot_dimension_numbers<[1], [0], [0], [1], [0, 0, 1, 1], [], []>} : vector<8x128xf32>, vector<128x512xf32>, vector<8x512xf32> -> vector<8x512xf32>
    %c0_3 = arith.constant 0 : index
    %c0_4 = arith.constant 0 : index
    %3 = vector.load %arg3[%c0_3, %c0_4] : memref<8x1xf32, #tpu.memory_space<vmem>>, vector<8x1xf32>
    %4 = vector.broadcast %3 : vector<8x1xf32> to vector<8x512xf32>
    %5 = arith.addf %2, %4 : vector<8x512xf32>
    %cst_5 = arith.constant 0.000000e+00 : f32
    %6 = vector.broadcast %cst_5 : f32 to vector<8x512xf32>
    %7 = arith.maximumf %5, %6 : vector<8x512xf32>
    %c0_6 = arith.constant 0 : index
    %c0_7 = arith.constant 0 : index
    %8 = vector.load %arg4[%c0_6, %c0_7] : memref<8x512xf32, #tpu.memory_space<vmem>>, vector<8x512xf32>
    tpu.vector_store %arg4[%c0_6, %c0_7], %7 {strides = array<i32>} : memref<8x512xf32, #tpu.memory_space<vmem>>, vector<8x512xf32>,
    return
  }
  func.func @transform_0(%arg0: i32) -> (i32, i32) {
    %c0_i32 = arith.constant 0 : i32
    %c0_i32_0 = arith.constant 0 : i32
    %c0_i32_1 = arith.constant 0 : i32
    return %c0_i32, %c0_i32_0 : i32, i32
  }
  func.func @transform_1(%arg0: i32) -> (i32, i32) {
    %c0_i32 = arith.constant 0 : i32
    %c0_i32_0 = arith.constant 0 : i32
    return %c0_i32, %arg0 : i32, i32
  }
  func.func @transform_2(%arg0: i32) -> (i32, i32) {
    %c0_i32 = arith.constant 0 : i32
    %c0_i32_0 = arith.constant 0 : i32
    %c0_i32_1 = arith.constant 0 : i32
    return %c0_i32, %c0_i32_0 : i32, i32
  }
  func.func @transform_3(%arg0: i32) -> (i32, i32) {
    %c0_i32 = arith.constant 0 : i32
    %c0_i32_0 = arith.constant 0 : i32
    return %c0_i32, %arg0 : i32, i32
  }
}

module attributes {stable_mosaic.version = 11 : i64} {
  func.func @_maxpool3x3_s1_kernel(%arg0: i32, %arg1: memref<1x18x18xf32, #tpu.memory_space<vmem>>, %arg2: memref<1x16x16xf32, #tpu.memory_space<vmem>>) attributes {dimension_semantics = [#tpu.dimension_semantics<parallel>], iteration_bounds = array<i64: 1>, scalar_prefetch = 0 : i64, scratch_operands = 0 : i64, tpu.core_type = #tpu.core_type<tc>, window_params = [{transform_indices = @transform_0, window_bounds = array<i64: 1, 18, 18>}, {transform_indices = @transform_1, window_bounds = array<i64: 1, 16, 16>}]} {
    %c0 = arith.constant 0 : index
    %c0_0 = arith.constant 0 : index
    %c0_1 = arith.constant 0 : index
    %0 = vector.load %arg1[%c0, %c0_0, %c0_1] : memref<1x18x18xf32, #tpu.memory_space<vmem>>, vector<1x18x18xf32>
    %1 = vector.shape_cast %0 : vector<1x18x18xf32> to vector<18x18xf32>
    %2 = vector.extract_strided_slice %1 {offsets = [0, 0], sizes = [18, 16], strides = [1, 1]} : vector<18x18xf32> to vector<18x16xf32>
    %3 = vector.extract_strided_slice %1 {offsets = [0, 1], sizes = [18, 16], strides = [1, 1]} : vector<18x18xf32> to vector<18x16xf32>
    %4 = arith.maximumf %2, %3 : vector<18x16xf32>
    %5 = vector.extract_strided_slice %1 {offsets = [0, 2], sizes = [18, 16], strides = [1, 1]} : vector<18x18xf32> to vector<18x16xf32>
    %6 = arith.maximumf %4, %5 : vector<18x16xf32>
    %7 = vector.extract_strided_slice %6 {offsets = [0, 0], sizes = [16, 16], strides = [1, 1]} : vector<18x16xf32> to vector<16x16xf32>
    %8 = vector.extract_strided_slice %6 {offsets = [1, 0], sizes = [16, 16], strides = [1, 1]} : vector<18x16xf32> to vector<16x16xf32>
    %9 = arith.maximumf %7, %8 : vector<16x16xf32>
    %10 = vector.extract_strided_slice %6 {offsets = [2, 0], sizes = [16, 16], strides = [1, 1]} : vector<18x16xf32> to vector<16x16xf32>
    %11 = arith.maximumf %9, %10 : vector<16x16xf32>
    %c0_2 = arith.constant 0 : index
    %c0_3 = arith.constant 0 : index
    %c0_4 = arith.constant 0 : index
    %12 = vector.load %arg2[%c0_2, %c0_3, %c0_4] : memref<1x16x16xf32, #tpu.memory_space<vmem>>, vector<1x16x16xf32>
    %13 = vector.shape_cast %12 : vector<1x16x16xf32> to vector<16x16xf32>
    %14 = vector.shape_cast %11 : vector<16x16xf32> to vector<1x16x16xf32>
    tpu.vector_store %arg2[%c0_2, %c0_3, %c0_4], %14 {strides = array<i32>} : memref<1x16x16xf32, #tpu.memory_space<vmem>>, vector<1x16x16xf32>,
    return
  }
  func.func @transform_0(%arg0: i32) -> (i32, i32, i32) {
    %c0_i32 = arith.constant 0 : i32
    %c0_i32_0 = arith.constant 0 : i32
    %c0_i32_1 = arith.constant 0 : i32
    return %arg0, %c0_i32, %c0_i32_0 : i32, i32, i32
  }
  func.func @transform_1(%arg0: i32) -> (i32, i32, i32) {
    %c0_i32 = arith.constant 0 : i32
    %c0_i32_0 = arith.constant 0 : i32
    %c0_i32_1 = arith.constant 0 : i32
    return %arg0, %c0_i32, %c0_i32_0 : i32, i32, i32
  }
}

module attributes {stable_mosaic.version = 11 : i64} {
  func.func @_mlp3_relu_kernel(%arg0: memref<1x256xf32, #tpu.memory_space<vmem>>, %arg1: memref<256x128xf32, #tpu.memory_space<vmem>>, %arg2: memref<1x128xf32, #tpu.memory_space<vmem>>, %arg3: memref<128x128xf32, #tpu.memory_space<vmem>>, %arg4: memref<1x128xf32, #tpu.memory_space<vmem>>, %arg5: memref<128x128xf32, #tpu.memory_space<vmem>>, %arg6: memref<1x128xf32, #tpu.memory_space<vmem>>, %arg7: memref<1x128xf32, #tpu.memory_space<vmem>>) attributes {dimension_semantics = [], scalar_prefetch = 0 : i64, scratch_operands = 0 : i64, tpu.core_type = #tpu.core_type<tc>} {
    %c0 = arith.constant 0 : index
    %c0_0 = arith.constant 0 : index
    %0 = vector.load %arg0[%c0, %c0_0] : memref<1x256xf32, #tpu.memory_space<vmem>>, vector<1x256xf32>
    %c0_1 = arith.constant 0 : index
    %c0_2 = arith.constant 0 : index
    %1 = vector.load %arg1[%c0_1, %c0_2] : memref<256x128xf32, #tpu.memory_space<vmem>>, vector<256x128xf32>
    %cst = arith.constant dense<0.000000e+00> : vector<1x128xf32>
    %2 = tpu.matmul %0, %1, %cst {dimension_numbers = #tpu.dot_dimension_numbers<[1], [0], [0], [1], [0, 0, 1, 1], [], []>} : vector<1x256xf32>, vector<256x128xf32>, vector<1x128xf32> -> vector<1x128xf32>
    %c0_3 = arith.constant 0 : index
    %c0_4 = arith.constant 0 : index
    %3 = vector.load %arg2[%c0_3, %c0_4] : memref<1x128xf32, #tpu.memory_space<vmem>>, vector<1x128xf32>
    %4 = arith.addf %2, %3 : vector<1x128xf32>
    %cst_5 = arith.constant 0.000000e+00 : f32
    %5 = vector.broadcast %cst_5 : f32 to vector<1x128xf32>
    %6 = arith.maximumf %4, %5 : vector<1x128xf32>
    %c0_6 = arith.constant 0 : index
    %c0_7 = arith.constant 0 : index
    %7 = vector.load %arg3[%c0_6, %c0_7] : memref<128x128xf32, #tpu.memory_space<vmem>>, vector<128x128xf32>
    %cst_8 = arith.constant dense<0.000000e+00> : vector<1x128xf32>
    %8 = tpu.matmul %6, %7, %cst_8 {dimension_numbers = #tpu.dot_dimension_numbers<[1], [0], [0], [1], [0, 0, 1, 1], [], []>} : vector<1x128xf32>, vector<128x128xf32>, vector<1x128xf32> -> vector<1x128xf32>
    %c0_9 = arith.constant 0 : index
    %c0_10 = arith.constant 0 : index
    %9 = vector.load %arg4[%c0_9, %c0_10] : memref<1x128xf32, #tpu.memory_space<vmem>>, vector<1x128xf32>
    %10 = arith.addf %8, %9 : vector<1x128xf32>
    %cst_11 = arith.constant 0.000000e+00 : f32
    %11 = vector.broadcast %cst_11 : f32 to vector<1x128xf32>
    %12 = arith.maximumf %10, %11 : vector<1x128xf32>
    %c0_12 = arith.constant 0 : index
    %c0_13 = arith.constant 0 : index
    %13 = vector.load %arg5[%c0_12, %c0_13] : memref<128x128xf32, #tpu.memory_space<vmem>>, vector<128x128xf32>
    %cst_14 = arith.constant dense<0.000000e+00> : vector<1x128xf32>
    %14 = tpu.matmul %12, %13, %cst_14 {dimension_numbers = #tpu.dot_dimension_numbers<[1], [0], [0], [1], [0, 0, 1, 1], [], []>} : vector<1x128xf32>, vector<128x128xf32>, vector<1x128xf32> -> vector<1x128xf32>
    %c0_15 = arith.constant 0 : index
    %c0_16 = arith.constant 0 : index
    %15 = vector.load %arg6[%c0_15, %c0_16] : memref<1x128xf32, #tpu.memory_space<vmem>>, vector<1x128xf32>
    %16 = arith.addf %14, %15 : vector<1x128xf32>
    %cst_17 = arith.constant 0.000000e+00 : f32
    %17 = vector.broadcast %cst_17 : f32 to vector<1x128xf32>
    %18 = arith.maximumf %16, %17 : vector<1x128xf32>
    %c0_18 = arith.constant 0 : index
    %c0_19 = arith.constant 0 : index
    %19 = vector.load %arg7[%c0_18, %c0_19] : memref<1x128xf32, #tpu.memory_space<vmem>>, vector<1x128xf32>
    tpu.vector_store %arg7[%c0_18, %c0_19], %18 {strides = array<i32>} : memref<1x128xf32, #tpu.memory_space<vmem>>, vector<1x128xf32>,
    return
  }
}

</mosaic_0001>

<bundles_post_ra>
// kernel: lpnet_forward.7
= control target key start
LH: loop header
LB: loop body
LE: loop exit
PB: predicated region body
PF: predicated region fallthrough
CT: control target
= control target key end

     0   :  { %s689_s12 = smov 0   ;;  %s691_s13 = smov 0   ;;  %s945_s0 = inlined_call_operand.vmem [shape: f32[8,128], index: 0, kind: input, shape index: {}]   ;;  %s946_s1 = inlined_call_operand.vmem [shape: f32[128,7680], index: 1, kind: input, shape index: {}]   ;;  %s947_s2 = inlined_call_operand.vmem [shape: f32[8,1], index: 2, kind: input, shape index: {}]   ;;  %s948_s3 = inlined_call_operand.vmem [shape: f32[8,7680], index: 3, kind: output, shape index: {}]  }
   0x1   :  { %s693_s14 = smov 0  }
   0x2 LB: > { %s602_s15 = sadd.s32 4294967295, %s665_s14   ;;  %s706_s16 = sadd.s32 1, %s665_s14   ;;  %s665_s14 = sphi %s693_s14, %s951_s14   ;;  %s661_s13 = sphi %s691_s13, %s950_s13   ;;  %s657_s12 = sphi %s689_s12, %s949_s12  }
   0x3   : > { %s38_s17 = ssub.s32 %s665_s14, %s706_s16  ;;  %s41_s18 = sadd.s32 1, %s661_s13 }
   0x4   : > { %p39_p0 = scmp.eq.s32.totalorder %s38_s17, 0  ;;  %p48_p1 = scmp.ne.s32.totalorder %s661_s13, %s657_s12 }
   0x5   : > { %p49_p2 = scmp.eq.s32.totalorder %s665_s14, 0  ;;  %p605_p4 = scmp.ge.s32.totalorder %s665_s14, 15 }
   0x6   : > { %s715_s19 = scalar_select %p39_p0, %s661_s13, %s41_s18  }
   0x7   : > { %p50_p3 = por %p49_p2, %p48_p1  ;;  %127 = sbr.rel (%p605_p4) target bundleno = 48 (0x30), region = 24 }
   0xc   : > { %130 = sbr.rel (!%p50_p3) target bundleno = 48 (0x30), region = 28  ;;  %s132_s20 = sand.u32 (%p50_p3), 1, %s661_s13  }
   0xd   : > { %s615_s21 = sshll.u32 (%p50_p3), %s665_s14, 5  ;;  %s606_s22 = sshll.u32 (%p50_p3), %s132_s20, 9 }
   0xe   : > { %s723_s25 = scalar_lea.vmem (%p50_p3), %s946_s1, %s615_s21  ;;  %s728_s26 = scalar_lea.vmem (%p50_p3), [#allocation2], %s606_s22 }
   0xf   : > { %v150_v0 = vld [vmem:[%s723_s25] sm:$0xff] (%p50_p3)  ;;  %v152_v1 = vld [vmem:[%s723_s25 + $0x8] sm:$0xff] (%p50_p3)  ;;  %v154_v2 = vld [vmem:[%s723_s25 + $0x10] sm:$0xff] (%p50_p3) }
  0x10   : > { %151 = vst [vmem:[%s728_s26] sm:$0xff] (%p50_p3), %v150_v0  ;;  %153 = vst [vmem:[%s728_s26 + $0x8] sm:$0xff] (%p50_p3), %v152_v1  ;;  %v156_v3 = vld [vmem:[%s723_s25 + $0x18] sm:$0xff] (%p50_p3)  ;;  %v158_v4 = vld [vmem:[%s723_s25 + $0x1e0] sm:$0xff] (%p50_p3) }
  0x11   : > { %155 = vst [vmem:[%s728_s26 + $0x10] sm:$0xff] %v154_v2  ;;  %v160_v5 = vld [vmem:[%s723_s25 + $0x1e8] sm:$0xff]  ;;  %157 = vst [vmem:[%s728_s26 + $0x18] sm:$0xff] %v156_v3  ;;  %v162_v6 = vld [vmem:[%s723_s25 + $0x1f0] sm:$0xff] }
  0x12   : > { %159 = vst [vmem:[%s728_s26 + $0x20] sm:$0xff] %v158_v4  ;;  %161 = vst [vmem:[%s728_s26 + $0x28] sm:$0xff] %v160_v5  ;;  %v164_v7 = vld [vmem:[%s723_s25 + $0x1f8] sm:$0xff]  ;;  %v166_v8 = vld [vmem:[%s723_s25 + $0x3c0] sm:$0xff] }
  0x13   : > { %163 = vst [vmem:[%s728_s26 + $0x30] sm:$0xff] %v162_v6  ;;  %165 = vst [vmem:[%s728_s26 + $0x38] sm:$0xff] %v164_v7  ;;  %v168_v9 = vld [vmem:[%s723_s25 + $0x3c8] sm:$0xff]  ;;  %v170_v10 = vld [vmem:[%s723_s25 + $0x3d0] sm:$0xff] }
  0x14   : > { %167 = vst [vmem:[%s728_s26 + $0x40] sm:$0xff] %v166_v8  ;;  %v172_v11 = vld [vmem:[%s723_s25 + $0x3d8] sm:$0xff]  ;;  %169 = vst [vmem:[%s728_s26 + $0x48] sm:$0xff] %v168_v9  ;;  %v174_v12 = vld [vmem:[%s723_s25 + $0x5a0] sm:$0xff] }
  0x15   : > { %171 = vst [vmem:[%s728_s26 + $0x50] sm:$0xff] %v170_v10  ;;  %173 = vst [vmem:[%s728_s26 + $0x58] sm:$0xff] %v172_v11  ;;  %v176_v13 = vld [vmem:[%s723_s25 + $0x5a8] sm:$0xff]  ;;  %v178_v14 = vld [vmem:[%s723_s25 + $0x5b0] sm:$0xff] }
  0x16   : > { %175 = vst [vmem:[%s728_s26 + $0x60] sm:$0xff] %v174_v12  ;;  %177 = vst [vmem:[%s728_s26 + $0x68] sm:$0xff] %v176_v13  ;;  %v180_v15 = vld [vmem:[%s723_s25 + $0x5b8] sm:$0xff]  ;;  %v182_v16 = vld [vmem:[%s723_s25 + $0x780] sm:$0xff] }
  0x17   : > { %179 = vst [vmem:[%s728_s26 + $0x70] sm:$0xff] %v178_v14  ;;  %v184_v17 = vld [vmem:[%s723_s25 + $0x788] sm:$0xff]  ;;  %181 = vst [vmem:[%s728_s26 + $0x78] sm:$0xff] %v180_v15  ;;  %v186_v18 = vld [vmem:[%s723_s25 + $0x790] sm:$0xff] }
  0x18   : > { %183 = vst [vmem:[%s728_s26 + $0x80] sm:$0xff] %v182_v16  ;;  %185 = vst [vmem:[%s728_s26 + $0x88] sm:$0xff] %v184_v17  ;;  %v188_v19 = vld [vmem:[%s723_s25 + $0x798] sm:$0xff]  ;;  %v190_v20 = vld [vmem:[%s723_s25 + $0x960] sm:$0xff] }
  0x19   : > { %187 = vst [vmem:[%s728_s26 + $0x90] sm:$0xff] %v186_v18  ;;  %189 = vst [vmem:[%s728_s26 + $0x98] sm:$0xff] %v188_v19  ;;  %v192_v21 = vld [vmem:[%s723_s25 + $0x968] sm:$0xff]  ;;  %v194_v22 = vld [vmem:[%s723_s25 + $0x970] sm:$0xff] }
  0x1a   : > { %191 = vst [vmem:[%s728_s26 + $0xa0] sm:$0xff] %v190_v20  ;;  %v196_v23 = vld [vmem:[%s723_s25 + $0x978] sm:$0xff]  ;;  %193 = vst [vmem:[%s728_s26 + $0xa8] sm:$0xff] %v192_v21  ;;  %v198_v24 = vld [vmem:[%s723_s25 + $0xb40] sm:$0xff] }
  0x1b   : > { %195 = vst [vmem:[%s728_s26 + $0xb0] sm:$0xff] %v194_v22  ;;  %197 = vst [vmem:[%s728_s26 + $0xb8] sm:$0xff] %v196_v23  ;;  %v200_v25 = vld [vmem:[%s723_s25 + $0xb48] sm:$0xff]  ;;  %v202_v26 = vld [vmem:[%s723_s25 + $0xb50] sm:$0xff] }
  0x1c   : > { %199 = vst [vmem:[%s728_s26 + $0xc0] sm:$0xff] %v198_v24  ;;  %201 = vst [vmem:[%s728_s26 + $0xc8] sm:$0xff] %v200_v25  ;;  %v204_v27 = vld [vmem:[%s723_s25 + $0xb58] sm:$0xff]  ;;  %v206_v28 = vld [vmem:[%s723_s25 + $0xd20] sm:$0xff] }
  0x1d   : > { %203 = vst [vmem:[%s728_s26 + $0xd0] sm:$0xff] %v202_v26  ;;  %v208_v29 = vld [vmem:[%s723_s25 + $0xd28] sm:$0xff]  ;;  %205 = vst [vmem:[%s728_s26 + $0xd8] sm:$0xff] %v204_v27  ;;  %v210_v30 = vld [vmem:[%s723_s25 + $0xd30] sm:$0xff] }
  0x1e   : > { %207 = vst [vmem:[%s728_s26 + $0xe0] sm:$0xff] %v206_v28  ;;  %209 = vst [vmem:[%s728_s26 + $0xe8] sm:$0xff] %v208_v29  ;;  %v212_v31 = vld [vmem:[%s723_s25 + $0xd38] sm:$0xff]  ;;  %v214_v32 = vld [vmem:[%s723_s25 + $0xf00] sm:$0xff] }
  0x1f   : > { %211 = vst [vmem:[%s728_s26 + $0xf0] sm:$0xff] %v210_v30  ;;  %213 = vst [vmem:[%s728_s26 + $0xf8] sm:$0xff] %v212_v31  ;;  %v216_v33 = vld [vmem:[%s723_s25 + $0xf08] sm:$0xff]  ;;  %v218_v34 = vld [vmem:[%s723_s25 + $0xf10] sm:$0xff] }
  0x20   : > { %215 = vst [vmem:[%s728_s26 + $0x100] sm:$0xff] %v214_v32  ;;  %v220_v35 = vld [vmem:[%s723_s25 + $0xf18] sm:$0xff]  ;;  %217 = vst [vmem:[%s728_s26 + $0x108] sm:$0xff] %v216_v33  ;;  %v222_v36 = vld [vmem:[%s723_s25 + $0x10e0] sm:$0xff] }
  0x21   : > { %219 = vst [vmem:[%s728_s26 + $0x110] sm:$0xff] %v218_v34  ;;  %221 = vst [vmem:[%s728_s26 + $0x118] sm:$0xff] %v220_v35  ;;  %v224_v37 = vld [vmem:[%s723_s25 + $0x10e8] sm:$0xff]  ;;  %v226_v38 = vld [vmem:[%s723_s25 + $0x10f0] sm:$0xff] }
  0x22   : > { %223 = vst [vmem:[%s728_s26 + $0x120] sm:$0xff] %v222_v36  ;;  %225 = vst [vmem:[%s728_s26 + $0x128] sm:$0xff] %v224_v37  ;;  %v228_v39 = vld [vmem:[%s723_s25 + $0x10f8] sm:$0xff]  ;;  %v230_v40 = vld [vmem:[%s723_s25 + $0x12c0] sm:$0xff] }
  0x23   : > { %227 = vst [vmem:[%s728_s26 + $0x130] sm:$0xff] %v226_v38  ;;  %v232_v41 = vld [vmem:[%s723_s25 + $0x12c8] sm:$0xff]  ;;  %229 = vst [vmem:[%s728_s26 + $0x138] sm:$0xff] %v228_v39  ;;  %v234_v42 = vld [vmem:[%s723_s25 + $0x12d0] sm:$0xff] }
  0x24   : > { %231 = vst [vmem:[%s728_s26 + $0x140] sm:$0xff] %v230_v40  ;;  %233 = vst [vmem:[%s728_s26 + $0x148] sm:$0xff] %v232_v41  ;;  %v236_v43 = vld [vmem:[%s723_s25 + $0x12d8] sm:$0xff]  ;;  %v238_v44 = vld [vmem:[%s723_s25 + $0x14a0] sm:$0xff] }
  0x25   : > { %235 = vst [vmem:[%s728_s26 + $0x150] sm:$0xff] %v234_v42  ;;  %237 = vst [vmem:[%s728_s26 + $0x158] sm:$0xff] %v236_v43  ;;  %v240_v45 = vld [vmem:[%s723_s25 + $0x14a8] sm:$0xff]  ;;  %v242_v46 = vld [vmem:[%s723_s25 + $0x14b0] sm:$0xff] }
  0x26   : > { %239 = vst [vmem:[%s728_s26 + $0x160] sm:$0xff] %v238_v44  ;;  %v244_v47 = vld [vmem:[%s723_s25 + $0x14b8] sm:$0xff]  ;;  %241 = vst [vmem:[%s728_s26 + $0x168] sm:$0xff] %v240_v45  ;;  %v246_v48 = vld [vmem:[%s723_s25 + $0x1680] sm:$0xff] }
  0x27   : > { %243 = vst [vmem:[%s728_s26 + $0x170] sm:$0xff] %v242_v46  ;;  %245 = vst [vmem:[%s728_s26 + $0x178] sm:$0xff] %v244_v47  ;;  %v248_v49 = vld [vmem:[%s723_s25 + $0x1688] sm:$0xff]  ;;  %v250_v50 = vld [vmem:[%s723_s25 + $0x1690] sm:$0xff] }
  0x28   : > { %247 = vst [vmem:[%s728_s26 + $0x180] sm:$0xff] %v246_v48  ;;  %249 = vst [vmem:[%s728_s26 + $0x188] sm:$0xff] %v248_v49  ;;  %v252_v51 = vld [vmem:[%s723_s25 + $0x1698] sm:$0xff]  ;;  %v254_v52 = vld [vmem:[%s723_s25 + $0x1860] sm:$0xff] }
  0x29   : > { %251 = vst [vmem:[%s728_s26 + $0x190] sm:$0xff] %v250_v50  ;;  %v256_v53 = vld [vmem:[%s723_s25 + $0x1868] sm:$0xff]  ;;  %253 = vst [vmem:[%s728_s26 + $0x198] sm:$0xff] %v252_v51  ;;  %v258_v54 = vld [vmem:[%s723_s25 + $0x1870] sm:$0xff] }
  0x2a   : > { %255 = vst [vmem:[%s728_s26 + $0x1a0] sm:$0xff] %v254_v52  ;;  %257 = vst [vmem:[%s728_s26 + $0x1a8] sm:$0xff] %v256_v53  ;;  %v260_v55 = vld [vmem:[%s723_s25 + $0x1878] sm:$0xff]  ;;  %v262_v56 = vld [vmem:[%s723_s25 + $0x1a40] sm:$0xff] }
  0x2b   : > { %259 = vst [vmem:[%s728_s26 + $0x1b0] sm:$0xff] %v258_v54  ;;  %261 = vst [vmem:[%s728_s26 + $0x1b8] sm:$0xff] %v260_v55  ;;  %v264_v57 = vld [vmem:[%s723_s25 + $0x1a48] sm:$0xff]  ;;  %v266_v58 = vld [vmem:[%s723_s25 + $0x1a50] sm:$0xff] }
  0x2c   : > { %263 = vst [vmem:[%s728_s26 + $0x1c0] sm:$0xff] %v262_v56  ;;  %v268_v59 = vld [vmem:[%s723_s25 + $0x1a58] sm:$0xff]  ;;  %265 = vst [vmem:[%s728_s26 + $0x1c8] sm:$0xff] %v264_v57  ;;  %v270_v60 = vld [vmem:[%s723_s25 + $0x1c20] sm:$0xff] }
  0x2d   : > { %267 = vst [vmem:[%s728_s26 + $0x1d0] sm:$0xff] %v266_v58  ;;  %269 = vst [vmem:[%s728_s26 + $0x1d8] sm:$0xff] %v268_v59  ;;  %v272_v61 = vld [vmem:[%s723_s25 + $0x1c28] sm:$0xff]  ;;  %v274_v62 = vld [vmem:[%s723_s25 + $0x1c30] sm:$0xff] }
  0x2e   : > { %271 = vst [vmem:[%s728_s26 + $0x1e0] sm:$0xff] %v270_v60  ;;  %273 = vst [vmem:[%s728_s26 + $0x1e8] sm:$0xff] %v272_v61  ;;  %v276_v63 = vld [vmem:[%s723_s25 + $0x1c38] sm:$0xff] }
  0x2f   : > { %275 = vst [vmem:[%s728_s26 + $0x1f0] sm:$0xff] %v274_v62  ;;  %277 = vst [vmem:[%s728_s26 + $0x1f8] sm:$0xff] %v276_v63 }
  0x30 PF: > { %p609_p5 = scmp.ge.s32.totalorder %s665_s14, 1  ;;  %p282_p6 = scmp.lt.s32.totalorder %s665_s14, 16 }
  0x32   : > { %p283_p7 = pnand %p609_p5, %p282_p6 }
  0x33   : > { %s289_s27 = sand.u32 (!%p283_p7), 1, %s657_s12   ;;  %s611_s7 = sshll.u32 (!%p283_p7), %s602_s15, 2 }
  0x34   : > { %286 = sbr.rel (%p283_p7) target bundleno = 292 (0x124), region = 51  ;;  %s610_s30 = sshll.u32 (!%p283_p7), %s289_s27, 9 }
  0x35   : > { %s861_s4 = scalar_lea.vmem (!%p283_p7), [#allocation2], %s610_s30  ;;  %p314_p8 = scmp.lt.s32.totalorder (!%p283_p7), %s611_s7, 59 }
  0x39   : > { %v384_v0 = vld [vmem:[%s947_s2] sm:$0xff]  ;;  %v667_v1 = vmov 0.0   ;;  %v668_v2 = vmov 0   ;;  %v381_v3 = vld [vmem:[%s861_s4 + $0x1e8] sm:$0xff]  ;;  %v383_v4 = vld [vmem:[%s861_s4 + $0x1f8] sm:$0xff]  ;;  %s953_s7 = smov (!%p314_p8, %s611_s7), 59 }
  0x3a   : > { %454 = vmatprep.mubr.f32.mxu0 %v667_v1  ;;  %525 = vmatprep.mubr.f32.mxu1 %v667_v1  ;;  %v380_v5 = vld [vmem:[%s861_s4 + $0x1e0] sm:$0xff]  ;;  %v382_v6 = vld [vmem:[%s861_s4 + $0x1f0] sm:$0xff]  ;;  %v377_v7 = vld [vmem:[%s861_s4 + $0x1c8] sm:$0xff]  ;;  %s612_s8 = sshll.u32 %s953_s7, 3 }
  0x3b   : > { %642 = vset.pattern.permute.xlu0 %v668_v2  ;;  %390 = vmatprep.subr.mxu0 %v381_v3  ;;  %v379_v8 = vld [vmem:[%s861_s4 + $0x1d8] sm:$0xff]  ;;  %v376_v9 = vld [vmem:[%s861_s4 + $0x1c0] sm:$0xff]  ;;  %v378_v10 = vld [vmem:[%s861_s4 + $0x1d0] sm:$0xff]  ;;  %s317_s11 = scalar_lea.vmem %s948_s3, %s612_s8 }
  0x3c   : > { %387 = vperm.xlu0 %642, %v384_v0   ;;  %461 = vmatprep.subr.mxu1 %v383_v4  ;;  %v373_v11 = vld [vmem:[%s861_s4 + $0x1a8] sm:$0xff]  ;;  %v375_v12 = vld [vmem:[%s861_s4 + $0x1b8] sm:$0xff]  ;;  %v372_v13 = vld [vmem:[%s861_s4 + $0x1a0] sm:$0xff] }
  0x3d   : > { %391 = vmatpush1.msra.mxu0 %v380_v5  ;;  %462 = vmatpush1.msra.mxu1 %v382_v6  ;;  %v374_v14 = vld [vmem:[%s861_s4 + $0x1b0] sm:$0xff]  ;;  %v369_v15 = vld [vmem:[%s861_s4 + $0x188] sm:$0xff]  ;;  %v371_v16 = vld [vmem:[%s861_s4 + $0x198] sm:$0xff] }
  0x3e   : > { %392 = vmatprep.subr.mxu0 %v377_v7  ;;  %463 = vmatprep.subr.mxu1 %v379_v8  ;;  %v368_v17 = vld [vmem:[%s861_s4 + $0x180] sm:$0xff]  ;;  %v370_v18 = vld [vmem:[%s861_s4 + $0x190] sm:$0xff]  ;;  %v365_v19 = vld [vmem:[%s861_s4 + $0x168] sm:$0xff] }
  0x3f   : > { %393 = vmatpush1.msra.mxu0 %v376_v9  ;;  %464 = vmatpush1.msra.mxu1 %v378_v10  ;;  %v367_v20 = vld [vmem:[%s861_s4 + $0x178] sm:$0xff]  ;;  %v364_v21 = vld [vmem:[%s861_s4 + $0x160] sm:$0xff]  ;;  %v366_v22 = vld [vmem:[%s861_s4 + $0x170] sm:$0xff] }
  0x40   : > { %394 = vmatprep.subr.mxu0 %v373_v11  ;;  %465 = vmatprep.subr.mxu1 %v375_v12  ;;  %v361_v23 = vld [vmem:[%s861_s4 + $0x148] sm:$0xff]  ;;  %v363_v24 = vld [vmem:[%s861_s4 + $0x158] sm:$0xff]  ;;  %v360_v25 = vld [vmem:[%s861_s4 + $0x140] sm:$0xff] }
  0x41   : > { %395 = vmatpush1.msra.mxu0 %v372_v13  ;;  %466 = vmatpush1.msra.mxu1 %v374_v14  ;;  %v362_v26 = vld [vmem:[%s861_s4 + $0x150] sm:$0xff]  ;;  %v357_v27 = vld [vmem:[%s861_s4 + $0x128] sm:$0xff]  ;;  %v359_v28 = vld [vmem:[%s861_s4 + $0x138] sm:$0xff] }
  0x42   : > { %396 = vmatprep.subr.mxu0 %v369_v15  ;;  %467 = vmatprep.subr.mxu1 %v371_v16  ;;  %v356_v29 = vld [vmem:[%s861_s4 + $0x120] sm:$0xff]  ;;  %v358_v30 = vld [vmem:[%s861_s4 + $0x130] sm:$0xff]  ;;  %v353_v31 = vld [vmem:[%s861_s4 + $0x108] sm:$0xff] }
  0x43   : > { %397 = vmatpush1.msra.mxu0 %v368_v17  ;;  %468 = vmatpush1.msra.mxu1 %v370_v18  ;;  %v355_v32 = vld [vmem:[%s861_s4 + $0x118] sm:$0xff]  ;;  %v352_v33 = vld [vmem:[%s861_s4 + $0x100] sm:$0xff]  ;;  %v354_v34 = vld [vmem:[%s861_s4 + $0x110] sm:$0xff] }
  0x44   : > { %398 = vmatprep.subr.mxu0 %v365_v19  ;;  %469 = vmatprep.subr.mxu1 %v367_v20  ;;  %v349_v35 = vld [vmem:[%s861_s4 + $0xe8] sm:$0xff]  ;;  %v351_v36 = vld [vmem:[%s861_s4 + $0xf8] sm:$0xff]  ;;  %v348_v37 = vld [vmem:[%s861_s4 + $0xe0] sm:$0xff] }
  0x45   : > { %399 = vmatpush1.msra.mxu0 %v364_v21  ;;  %470 = vmatpush1.msra.mxu1 %v366_v22  ;;  %v350_v38 = vld [vmem:[%s861_s4 + $0xf0] sm:$0xff]  ;;  %v345_v39 = vld [vmem:[%s861_s4 + $0xc8] sm:$0xff]  ;;  %v347_v40 = vld [vmem:[%s861_s4 + $0xd8] sm:$0xff] }
  0x46   : > { %400 = vmatprep.subr.mxu0 %v361_v23  ;;  %471 = vmatprep.subr.mxu1 %v363_v24  ;;  %v344_v41 = vld [vmem:[%s861_s4 + $0xc0] sm:$0xff]  ;;  %v346_v42 = vld [vmem:[%s861_s4 + $0xd0] sm:$0xff]  ;;  %v341_v43 = vld [vmem:[%s861_s4 + $0xa8] sm:$0xff] }
  0x47   : > { %401 = vmatpush1.msra.mxu0 %v360_v25  ;;  %472 = vmatpush1.msra.mxu1 %v362_v26  ;;  %v343_v44 = vld [vmem:[%s861_s4 + $0xb8] sm:$0xff]  ;;  %v340_v45 = vld [vmem:[%s861_s4 + $0xa0] sm:$0xff]  ;;  %v342_v46 = vld [vmem:[%s861_s4 + $0xb0] sm:$0xff] }
  0x48   : > { %402 = vmatprep.subr.mxu0 %v357_v27  ;;  %473 = vmatprep.subr.mxu1 %v359_v28  ;;  %v337_v47 = vld [vmem:[%s861_s4 + $0x88] sm:$0xff]  ;;  %v339_v48 = vld [vmem:[%s861_s4 + $0x98] sm:$0xff]  ;;  %v336_v49 = vld [vmem:[%s861_s4 + $0x80] sm:$0xff] }
  0x49   : > { %403 = vmatpush1.msra.mxu0 %v356_v29  ;;  %474 = vmatpush1.msra.mxu1 %v358_v30  ;;  %v338_v50 = vld [vmem:[%s861_s4 + $0x90] sm:$0xff]  ;;  %v333_v51 = vld [vmem:[%s861_s4 + $0x68] sm:$0xff]  ;;  %v335_v52 = vld [vmem:[%s861_s4 + $0x78] sm:$0xff] }
  0x4a   : > { %404 = vmatprep.subr.mxu0 %v353_v31  ;;  %475 = vmatprep.subr.mxu1 %v355_v32  ;;  %v332_v53 = vld [vmem:[%s861_s4 + $0x60] sm:$0xff]  ;;  %v334_v54 = vld [vmem:[%s861_s4 + $0x70] sm:$0xff]  ;;  %v329_v55 = vld [vmem:[%s861_s4 + $0x48] sm:$0xff] }
  0x4b   : > { %405 = vmatpush1.msra.mxu0 %v352_v33  ;;  %476 = vmatpush1.msra.mxu1 %v354_v34  ;;  %v331_v56 = vld [vmem:[%s861_s4 + $0x58] sm:$0xff]  ;;  %v328_v57 = vld [vmem:[%s861_s4 + $0x40] sm:$0xff]  ;;  %v330_v58 = vld [vmem:[%s861_s4 + $0x50] sm:$0xff] }
  0x4c   : > { %406 = vmatprep.subr.mxu0 %v349_v35  ;;  %477 = vmatprep.subr.mxu1 %v351_v36  ;;  %v325_v59 = vld [vmem:[%s861_s4 + $0x28] sm:$0xff]  ;;  %v327_v60 = vld [vmem:[%s861_s4 + $0x38] sm:$0xff]  ;;  %v324_v61 = vld [vmem:[%s861_s4 + $0x20] sm:$0xff] }
  0x4d   : > { %407 = vmatpush1.msra.mxu0 %v348_v37  ;;  %478 = vmatpush1.msra.mxu1 %v350_v38  ;;  %v326_v62 = vld [vmem:[%s861_s4 + $0x30] sm:$0xff]  ;;  %v321_v63 = vld [vmem:[%s861_s4 + $0x8] sm:$0xff]  ;;  %v323_v0 = vld [vmem:[%s861_s4 + $0x18] sm:$0xff] }
  0x4e   : > { %408 = vmatprep.subr.mxu0 %v345_v39  ;;  %479 = vmatprep.subr.mxu1 %v347_v40  ;;  %v320_v1 = vld [vmem:[%s861_s4] sm:$0xff]  ;;  %v322_v2 = vld [vmem:[%s861_s4 + $0x10] sm:$0xff] }
  0x4f   : > { %409 = vmatpush1.msra.mxu0 %v344_v41  ;;  %480 = vmatpush1.msra.mxu1 %v346_v42  ;;  %v319_v3 = vld [vmem:[%s945_s0] sm:$0xff] }
  0x50   : > { %410 = vmatprep.subr.mxu0 %v341_v43  ;;  %481 = vmatprep.subr.mxu1 %v343_v44 }
  0x51   : > { %411 = vmatpush1.msra.mxu0 %v340_v45  ;;  %482 = vmatpush1.msra.mxu1 %v342_v46 }
  0x52   : > { %412 = vmatprep.subr.mxu0 %v337_v47  ;;  %483 = vmatprep.subr.mxu1 %v339_v48 }
  0x53   : > { %413 = vmatpush1.msra.mxu0 %v336_v49  ;;  %484 = vmatpush1.msra.mxu1 %v338_v50 }
  0x54   : > { %414 = vmatprep.subr.mxu0 %v333_v51  ;;  %485 = vmatprep.subr.mxu1 %v335_v52 }
  0x55   : > { %415 = vmatpush1.msra.mxu0 %v332_v53  ;;  %486 = vmatpush1.msra.mxu1 %v334_v54 }
  0x56   : > { %416 = vmatprep.subr.mxu0 %v329_v55  ;;  %487 = vmatprep.subr.mxu1 %v331_v56 }
  0x57   : > { %417 = vmatpush1.msra.mxu0 %v328_v57  ;;  %488 = vmatpush1.msra.mxu1 %v330_v58 }
  0x58   : > { %418 = vmatprep.subr.mxu0 %v325_v59  ;;  %489 = vmatprep.subr.mxu1 %v327_v60 }
  0x59   : > { %419 = vmatpush1.msra.mxu0 %v324_v61  ;;  %490 = vmatpush1.msra.mxu1 %v326_v62 }
  0x5a   : > { %420 = vmatprep.subr.mxu0 %v321_v63  ;;  %491 = vmatprep.subr.mxu1 %v323_v0 }
  0x5b   : > { %421 = vmatpush1.msra.mxu0 %v320_v1  ;;  %492 = vmatpush1.msra.mxu1 %v322_v2 }
  0x5c   : > { %455 = vmatmul.mubr.f32.vlgmr.msra.gmra.mxu0 %v319_v3  ;;  %526 = vmatmul.mubr.f32.vlgmr.msra.gmra.mxu1 %v319_v3 }
  0xb7   : > { %v388_v4 = vpop.permute.xlu0 %387 }
 0x11c   : > { %v456_v5 = vpop.f32.mrf.mxu0  ;;  %v527_v6 = vpop.f32.mrf.mxu1 }
 0x11d   : > { %v457_v7 = vadd.f32 %v456_v5, %v388_v4  ;;  %v528_v8 = vadd.f32 %v527_v6, %v388_v4 }
 0x11e   : > { %v458_v9 = vpop.f32.mrf.mxu0  ;;  %v529_v10 = vpop.f32.mrf.mxu1 }
 0x11f   : > { %v532_v11 = vmax.f32 %v457_v7, 0.0  ;;  %v534_v12 = vmax.f32 %v528_v8, 0.0  ;;  %v459_v13 = vadd.f32 %v458_v9, %v388_v4  ;;  %v530_v14 = vadd.f32 %v529_v10, %v388_v4 }
 0x121   : > { %536 = vst [vmem:[%s317_s11] sm:$0xff] %v532_v11  ;;  %538 = vst [vmem:[%s317_s11 + $0x10] sm:$0xff] %v534_v12  ;;  %v533_v15 = vmax.f32 %v459_v13, 0.0  ;;  %v535_v16 = vmax.f32 %v530_v14, 0.0 }
 0x123   : > { %537 = vst [vmem:[%s317_s11 + $0x8] sm:$0xff] %v533_v15  ;;  %539 = vst [vmem:[%s317_s11 + $0x18] sm:$0xff] %v535_v16 }
 0x124 PF: > { %p10_p9 = scmp.ge.s32.totalorder %s706_s16, 17   ;;  %s949_s12 = smov %s661_s13 }
 0x125   : > { %s950_s13 = smov %s715_s19  ;;  %s951_s14 = smov %s706_s16 }
 0x126   :  { %12 = sbr.rel (!%p10_p9) target bundleno = 2 (0x2), region = 90 }

// kernel: lpnet_forward.8
= control target key start
LH: loop header
LB: loop body
LE: loop exit
PB: predicated region body
PF: predicated region fallthrough
CT: control target
= control target key end

     0   :  { %s434_s6 = smov 0   ;;  %s550_s0 = inlined_call_operand.vmem [shape: f32[3,87,87], index: 0, kind: input, shape index: {}]   ;;  %s551_s1 = inlined_call_operand.vmem [shape: f32[3,85,85], index: 1, kind: output, shape index: {}]  }
   0x1 LB: > { %s394_s7 = sadd.s32 4294967295, %s420_s6   ;;  %p398_p0 = scmp.ge.s32.totalorder %s420_s6, 1  ;;  %s420_s6 = sphi %s434_s6, %s11_s6  }
   0x2   : > { %p87_p1 = scmp.lt.s32.totalorder %s420_s6, 4 }
   0x4   : > { %p88_p2 = pnand %p398_p0, %p87_p1 }
   0x5   : > { %p107_p3 = scmp.lt.s32.totalorder (!%p88_p2), %s394_s7, 2  ;;  %s422_s12 = smov (!%p88_p2), 127  }
   0x6   : > { %91 = sbr.rel (%p88_p2) target bundleno = 181 (0xb5), region = 24  ;;  %s423_s13 = smov (!%p88_p2), 126  }
   0xb   : > { %s553_s7 = smov (!%p107_p3, %s394_s7), 2  ;;  %vm238_vm0 = vcmask 1046528   ;;  %vm282_vm1 = vcmask 1045504   ;;  %vm326_vm2 = vcmask 695296   ;;  %vm337_vm3 = vcmask 692224  }
   0xc   : > { %s403_s8 = smul.u32 88, %s553_s7 }
   0xe   : > { %s111_s11 = scalar_lea.vmem %s550_s0, %s403_s8  ;;  %s497_s16 = scalar_lea.vmem %s551_s1, %s403_s8 }
   0xf   : > { %v119_v0 = vld [vmem:[%s111_s11 + $0x10] sm:$0xff]  ;;  %v117_v1 = vld [vmem:[%s111_s11] sm:$0xff]  ;;  %v450_v2 = vld [vmem:[%s111_s11 + $0x18] sm:$0xff] }
  0x10   : > { %143 = vrot.lane.b32.xlu1 %v119_v0, %s422_s12  ;;  %139 = vrot.lane.b32.xlu0 %v117_v1, %s422_s12  ;;  %v118_v3 = vld [vmem:[%s111_s11 + $0x8] sm:$0xff]  ;;  %v455_v5 = vld [vmem:[%s111_s11 + $0x20] sm:$0xff] }
  0x11   : > { %v453_v4 = vld [vmem:[%s111_s11 + $0x28] sm:$0xff]  ;;  %v459_v6 = vld [vmem:[%s111_s11 + $0x38] sm:$0xff]  ;;  %v461_v7 = vld [vmem:[%s111_s11 + $0x30] sm:$0xff] }
  0x12   : > { %v465_v8 = vld [vmem:[%s111_s11 + $0x48] sm:$0xff]  ;;  %v467_v9 = vld [vmem:[%s111_s11 + $0x40] sm:$0xff]  ;;  %v471_v10 = vld [vmem:[%s111_s11 + $0x50] sm:$0x7f] }
  0x14   : > { %145 = vrot.lane.b32.xlu1 %v450_v2, %s422_s12  ;;  %141 = vrot.lane.b32.xlu0 %v118_v3, %s422_s12 }
  0x18   : > { %149 = vrot.lane.b32.xlu1 %v453_v4, %s422_s12  ;;  %147 = vrot.lane.b32.xlu0 %v455_v5, %s422_s12 }
  0x1c   : > { %153 = vrot.lane.b32.xlu1 %v459_v6, %s422_s12  ;;  %151 = vrot.lane.b32.xlu0 %v461_v7, %s422_s12 }
  0x20   : > { %157 = vrot.lane.b32.xlu1 %v465_v8, %s422_s12  ;;  %155 = vrot.lane.b32.xlu0 %v467_v9, %s422_s12 }
  0x24   : > { %183 = vrot.lane.b32.xlu1 %v117_v1, %s423_s13  ;;  %159 = vrot.lane.b32.xlu0 %v471_v10, %s422_s12 }
  0x28   : > { %187 = vrot.lane.b32.xlu1 %v119_v0, %s423_s13  ;;  %185 = vrot.lane.b32.xlu0 %v118_v3, %s423_s13 }
  0x2c   : > { %191 = vrot.lane.b32.xlu1 %v455_v5, %s423_s13  ;;  %189 = vrot.lane.b32.xlu0 %v450_v2, %s423_s13 }
  0x30   : > { %195 = vrot.lane.b32.xlu1 %v461_v7, %s423_s13  ;;  %193 = vrot.lane.b32.xlu0 %v453_v4, %s423_s13 }
  0x34   : > { %199 = vrot.lane.b32.xlu1 %v467_v9, %s423_s13  ;;  %197 = vrot.lane.b32.xlu0 %v459_v6, %s423_s13 }
  0x38   : > { %203 = vrot.lane.b32.xlu1 %v471_v10, %s423_s13  ;;  %201 = vrot.lane.b32.xlu0 %v465_v8, %s423_s13 }
  0x82   : > { %v144_v11 = vpop.permute.xlu1 %143  ;;  %v140_v12 = vpop.permute.xlu0 %139 }
  0x83   : > { %v172_v21 = vmax.f32 %v117_v1, %v140_v12  ;;  %v174_v25 = vmax.f32 %v119_v0, %v144_v11 }
  0x86   : > { %v146_v13 = vpop.permute.xlu1 %145  ;;  %v142_v14 = vpop.permute.xlu0 %141 }
  0x87   : > { %v173_v26 = vmax.f32 %v118_v3, %v142_v14  ;;  %v175_v36 = vmax.f32 %v450_v2, %v146_v13 }
  0x8a   : > { %v150_v15 = vpop.permute.xlu1 %149  ;;  %v148_v16 = vpop.permute.xlu0 %147 }
  0x8b   : > { %v176_v37 = vmax.f32 %v455_v5, %v148_v16  ;;  %v177_v47 = vmax.f32 %v453_v4, %v150_v15 }
  0x8e   : > { %v482_v17 = vpop.permute.xlu1 %153  ;;  %v152_v18 = vpop.permute.xlu0 %151 }
  0x8f   : > { %v178_v48 = vmax.f32 %v461_v7, %v152_v18  ;;  %v179_v61 = vmax.f32 %v459_v6, %v482_v17 }
  0x92   : > { %v484_v19 = vpop.permute.xlu1 %157  ;;  %v156_v20 = vpop.permute.xlu0 %155 }
  0x93   : > { %v180_v62 = vmax.f32 %v467_v9, %v156_v20  ;;  %v181_v15 = vmax.f32 %v465_v8, %v484_v19 }
  0x96   : > { %v184_v22 = vpop.permute.xlu1 %183  ;;  %v486_v23 = vpop.permute.xlu0 %159 }
  0x97   : > { %v216_v24 = vmax.f32 %v172_v21, %v184_v22  ;;  %v182_v16 = vmax.f32 %v471_v10, %v486_v23 }
  0x99   : > { %v239_v31 = vrot.slane %v216_v24, 1  ;;  %v283_v40 = vrot.slane %v216_v24, 2 }
  0x9a   : > { %v188_v27 = vpop.permute.xlu1 %187  ;;  %v186_v28 = vpop.permute.xlu0 %185 }
  0x9b   : > { %v218_v29 = vmax.f32 %v174_v25, %v188_v27  ;;  %v217_v30 = vmax.f32 %v173_v26, %v186_v28 }
  0x9d   : > { %v242_v32 = vrot.slane %v218_v29, 1  ;;  %v286_v33 = vrot.slane %v218_v29, 2  ;;  %v240_v34 = vrot.slane %v217_v30, 1  ;;  %v284_v35 = vrot.slane %v217_v30, 2 }
  0x9e   : > { %v192_v38 = vpop.permute.xlu1 %191  ;;  %v190_v39 = vpop.permute.xlu0 %189 }
  0x9f   : > { %v241_v41 = vsel %vm238_vm0, %v239_v31, %v240_v34  ;;  %v243_v42 = vsel %vm238_vm0, %v240_v34, %v242_v32  ;;  %v220_v45 = vmax.f32 %v176_v37, %v192_v38  ;;  %v219_v46 = vmax.f32 %v175_v36, %v190_v39 }
  0xa0   : > { %v271_v43 = vmax.f32 %v216_v24, %v241_v41  ;;  %v272_v44 = vmax.f32 %v217_v30, %v243_v42  ;;  %v285_v49 = vsel %vm282_vm1, %v283_v40, %v284_v35  ;;  %v287_v50 = vsel %vm282_vm1, %v284_v35, %v286_v33 }
  0xa1   : > { %v246_v53 = vrot.slane %v220_v45, 1  ;;  %v290_v54 = vrot.slane %v220_v45, 2  ;;  %v244_v57 = vrot.slane %v219_v46, 1  ;;  %v288_v58 = vrot.slane %v219_v46, 2 }
  0xa2   : > { %v315_v51 = vmax.f32 %v271_v43, %v285_v49  ;;  %v316_v52 = vmax.f32 %v272_v44, %v287_v50  ;;  %v196_v55 = vpop.permute.xlu1 %195  ;;  %v194_v56 = vpop.permute.xlu0 %193 }
  0xa3   : > { %v222_v59 = vmax.f32 %v178_v48, %v196_v55  ;;  %v221_v60 = vmax.f32 %v177_v47, %v194_v56  ;;  %v245_v63 = vsel %vm238_vm0, %v242_v32, %v244_v57  ;;  %v247_v0 = vsel %vm238_vm0, %v244_v57, %v246_v53 }
  0xa4   : > { %327 = vst.msk [vmem:[%s497_s16] sm:$0xff] %vm326_vm2, %v315_v51  ;;  %328 = vst.msk [vmem:[%s497_s16 + $0x8] sm:$0xff] %vm326_vm2, %v316_v52  ;;  %v289_v1 = vsel %vm282_vm1, %v286_v33, %v288_v58  ;;  %v291_v2 = vsel %vm282_vm1, %v288_v58, %v290_v54  ;;  %v273_v3 = vmax.f32 %v218_v29, %v245_v63 }
  0xa5   : > { %v274_v4 = vmax.f32 %v219_v46, %v247_v0  ;;  %v250_v5 = vrot.slane %v222_v59, 1  ;;  %v294_v7 = vrot.slane %v222_v59, 2  ;;  %v248_v11 = vrot.slane %v221_v60, 1 }
  0xa6   : > { %v200_v6 = vpop.permute.xlu1 %199  ;;  %v198_v9 = vpop.permute.xlu0 %197  ;;  %v292_v12 = vrot.slane %v221_v60, 2  ;;  %v317_v17 = vmax.f32 %v273_v3, %v289_v1 }
  0xa7   : > { %v224_v13 = vmax.f32 %v180_v62, %v200_v6  ;;  %v223_v14 = vmax.f32 %v179_v61, %v198_v9  ;;  %v318_v18 = vmax.f32 %v274_v4, %v291_v2  ;;  %v249_v20 = vsel %vm238_vm0, %v246_v53, %v248_v11 }
  0xa8   : > { %v251_v21 = vsel %vm238_vm0, %v248_v11, %v250_v5  ;;  %v293_v22 = vsel %vm282_vm1, %v290_v54, %v292_v12  ;;  %v295_v24 = vsel %vm282_vm1, %v292_v12, %v294_v7  ;;  %329 = vst.msk [vmem:[%s497_s16 + $0x10] sm:$0xff] %vm326_vm2, %v317_v17  ;;  %v275_v8 = vmax.f32 %v220_v45, %v249_v20 }
  0xa9   : > { %330 = vst.msk [vmem:[%s497_s16 + $0x18] sm:$0xff] %vm326_vm2, %v318_v18  ;;  %v276_v19 = vmax.f32 %v221_v60, %v251_v21  ;;  %v254_v25 = vrot.slane %v224_v13, 1  ;;  %v298_v10 = vrot.slane %v224_v13, 2  ;;  %v252_v27 = vrot.slane %v223_v14, 1 }
  0xaa   : > { %v204_v23 = vpop.permute.xlu1 %203  ;;  %v202_v26 = vpop.permute.xlu0 %201  ;;  %v296_v28 = vrot.slane %v223_v14, 2  ;;  %v319_v31 = vmax.f32 %v275_v8, %v293_v22 }
  0xab   : > { %v226_v29 = vmax.f32 %v182_v16, %v204_v23  ;;  %v225_v30 = vmax.f32 %v181_v15, %v202_v26  ;;  %v320_v32 = vmax.f32 %v276_v19, %v295_v24  ;;  %v253_v33 = vsel %vm238_vm0, %v250_v5, %v252_v27 }
  0xac   : > { %v255_v34 = vsel %vm238_vm0, %v252_v27, %v254_v25  ;;  %331 = vst.msk [vmem:[%s497_s16 + $0x20] sm:$0xff] %vm326_vm2, %v319_v31  ;;  %v277_v35 = vmax.f32 %v222_v59, %v253_v33  ;;  %v297_v37 = vsel %vm282_vm1, %v294_v7, %v296_v28  ;;  %v299_v39 = vsel %vm282_vm1, %v296_v28, %v298_v10 }
  0xad   : > { %332 = vst.msk [vmem:[%s497_s16 + $0x28] sm:$0xff] %vm326_vm2, %v320_v32  ;;  %v278_v36 = vmax.f32 %v223_v14, %v255_v34  ;;  %v258_v38 = vrot.slane %v226_v29, 1  ;;  %v302_v40 = vrot.slane %v226_v29, 2  ;;  %v256_v41 = vrot.slane %v225_v30, 1 }
  0xae   : > { %v300_v42 = vrot.slane %v225_v30, 2  ;;  %v321_v43 = vmax.f32 %v277_v35, %v297_v37 }
  0xaf   : > { %v322_v44 = vmax.f32 %v278_v36, %v299_v39  ;;  %v281_v45 = vmax.f32 %v226_v29, %v258_v38  ;;  %v257_v46 = vsel %vm238_vm0, %v254_v25, %v256_v41  ;;  %v259_v47 = vsel %vm238_vm0, %v256_v41, %v258_v38 }
  0xb0   : > { %333 = vst.msk [vmem:[%s497_s16 + $0x30] sm:$0xff] %vm326_vm2, %v321_v43  ;;  %v279_v49 = vmax.f32 %v224_v13, %v257_v46  ;;  %v280_v50 = vmax.f32 %v225_v30, %v259_v47  ;;  %v301_v51 = vsel %vm282_vm1, %v298_v10, %v300_v42  ;;  %v303_v52 = vsel %vm282_vm1, %v300_v42, %v302_v40 }
  0xb1   : > { %334 = vst.msk [vmem:[%s497_s16 + $0x38] sm:$0xff] %vm326_vm2, %v322_v44  ;;  %v325_v48 = vmax.f32 %v281_v45, %v302_v40 }
  0xb2   : > { %v323_v53 = vmax.f32 %v279_v49, %v301_v51  ;;  %v324_v54 = vmax.f32 %v280_v50, %v303_v52 }
  0xb3   : > { %338 = vst.msk [vmem:[%s497_s16 + $0x50] sm:$0x1f] %vm337_vm3, %v325_v48 }
  0xb4   : > { %335 = vst.msk [vmem:[%s497_s16 + $0x40] sm:$0xff] %vm326_vm2, %v323_v53  ;;  %336 = vst.msk [vmem:[%s497_s16 + $0x48] sm:$0xff] %vm326_vm2, %v324_v54 }
  0xb5 PF: > { %s11_s6 = sadd.s32 1, %s420_s6  }
  0xb6   : > { %p8_p4 = scmp.ge.s32.totalorder %s11_s6, 5  }
  0xb8   :  { %10 = sbr.rel (!%p8_p4) target bundleno = 1 (0x1), region = 54 }

// kernel: lpnet_forward.9
= control target key start
LH: loop header
LB: loop body
LE: loop exit
PB: predicated region body
PF: predicated region fallthrough
CT: control target
= control target key end

     0   :  { %s689_s12 = smov 0   ;;  %s691_s13 = smov 0   ;;  %s945_s0 = inlined_call_operand.vmem [shape: f32[8,128], index: 0, kind: input, shape index: {}]   ;;  %s946_s1 = inlined_call_operand.vmem [shape: f32[128,2048], index: 1, kind: input, shape index: {}]   ;;  %s947_s2 = inlined_call_operand.vmem [shape: f32[8,1], index: 2, kind: input, shape index: {}]   ;;  %s948_s3 = inlined_call_operand.vmem [shape: f32[8,2048], index: 3, kind: output, shape index: {}]  }
   0x1   :  { %s693_s14 = smov 0  }
   0x2 LB: > { %s602_s15 = sadd.s32 4294967295, %s665_s14   ;;  %s706_s16 = sadd.s32 1, %s665_s14   ;;  %s665_s14 = sphi %s693_s14, %s951_s14   ;;  %s661_s13 = sphi %s691_s13, %s950_s13   ;;  %s657_s12 = sphi %s689_s12, %s949_s12  }
   0x3   : > { %s38_s17 = ssub.s32 %s665_s14, %s706_s16  ;;  %s41_s18 = sadd.s32 1, %s661_s13 }
   0x4   : > { %p39_p0 = scmp.eq.s32.totalorder %s38_s17, 0  ;;  %p48_p1 = scmp.ne.s32.totalorder %s661_s13, %s657_s12 }
   0x5   : > { %p49_p2 = scmp.eq.s32.totalorder %s665_s14, 0  ;;  %p605_p4 = scmp.ge.s32.totalorder %s665_s14, 4 }
   0x6   : > { %s715_s19 = scalar_select %p39_p0, %s661_s13, %s41_s18  }
   0x7   : > { %p50_p3 = por %p49_p2, %p48_p1  ;;  %127 = sbr.rel (%p605_p4) target bundleno = 48 (0x30), region = 24 }
   0xc   : > { %130 = sbr.rel (!%p50_p3) target bundleno = 48 (0x30), region = 28  ;;  %s132_s20 = sand.u32 (%p50_p3), 1, %s661_s13  }
   0xd   : > { %s615_s21 = sshll.u32 (%p50_p3), %s665_s14, 5  ;;  %s606_s22 = sshll.u32 (%p50_p3), %s132_s20, 9 }
   0xe   : > { %s723_s25 = scalar_lea.vmem (%p50_p3), %s946_s1, %s615_s21  ;;  %s728_s26 = scalar_lea.vmem (%p50_p3), [#allocation2], %s606_s22 }
   0xf   : > { %v150_v0 = vld [vmem:[%s723_s25] sm:$0xff] (%p50_p3)  ;;  %v152_v1 = vld [vmem:[%s723_s25 + $0x8] sm:$0xff] (%p50_p3)  ;;  %v154_v2 = vld [vmem:[%s723_s25 + $0x10] sm:$0xff] (%p50_p3) }
  0x10   : > { %151 = vst [vmem:[%s728_s26] sm:$0xff] (%p50_p3), %v150_v0  ;;  %153 = vst [vmem:[%s728_s26 + $0x8] sm:$0xff] (%p50_p3), %v152_v1  ;;  %v156_v3 = vld [vmem:[%s723_s25 + $0x18] sm:$0xff] (%p50_p3)  ;;  %v158_v4 = vld [vmem:[%s723_s25 + $0x80] sm:$0xff] (%p50_p3) }
  0x11   : > { %155 = vst [vmem:[%s728_s26 + $0x10] sm:$0xff] %v154_v2  ;;  %v160_v5 = vld [vmem:[%s723_s25 + $0x88] sm:$0xff]  ;;  %157 = vst [vmem:[%s728_s26 + $0x18] sm:$0xff] %v156_v3  ;;  %v162_v6 = vld [vmem:[%s723_s25 + $0x90] sm:$0xff] }
  0x12   : > { %159 = vst [vmem:[%s728_s26 + $0x20] sm:$0xff] %v158_v4  ;;  %161 = vst [vmem:[%s728_s26 + $0x28] sm:$0xff] %v160_v5  ;;  %v164_v7 = vld [vmem:[%s723_s25 + $0x98] sm:$0xff]  ;;  %v166_v8 = vld [vmem:[%s723_s25 + $0x100] sm:$0xff] }
  0x13   : > { %163 = vst [vmem:[%s728_s26 + $0x30] sm:$0xff] %v162_v6  ;;  %165 = vst [vmem:[%s728_s26 + $0x38] sm:$0xff] %v164_v7  ;;  %v168_v9 = vld [vmem:[%s723_s25 + $0x108] sm:$0xff]  ;;  %v170_v10 = vld [vmem:[%s723_s25 + $0x110] sm:$0xff] }
  0x14   : > { %167 = vst [vmem:[%s728_s26 + $0x40] sm:$0xff] %v166_v8  ;;  %v172_v11 = vld [vmem:[%s723_s25 + $0x118] sm:$0xff]  ;;  %169 = vst [vmem:[%s728_s26 + $0x48] sm:$0xff] %v168_v9  ;;  %v174_v12 = vld [vmem:[%s723_s25 + $0x180] sm:$0xff] }
  0x15   : > { %171 = vst [vmem:[%s728_s26 + $0x50] sm:$0xff] %v170_v10  ;;  %173 = vst [vmem:[%s728_s26 + $0x58] sm:$0xff] %v172_v11  ;;  %v176_v13 = vld [vmem:[%s723_s25 + $0x188] sm:$0xff]  ;;  %v178_v14 = vld [vmem:[%s723_s25 + $0x190] sm:$0xff] }
  0x16   : > { %175 = vst [vmem:[%s728_s26 + $0x60] sm:$0xff] %v174_v12  ;;  %177 = vst [vmem:[%s728_s26 + $0x68] sm:$0xff] %v176_v13  ;;  %v180_v15 = vld [vmem:[%s723_s25 + $0x198] sm:$0xff]  ;;  %v182_v16 = vld [vmem:[%s723_s25 + $0x200] sm:$0xff] }
  0x17   : > { %179 = vst [vmem:[%s728_s26 + $0x70] sm:$0xff] %v178_v14  ;;  %v184_v17 = vld [vmem:[%s723_s25 + $0x208] sm:$0xff]  ;;  %181 = vst [vmem:[%s728_s26 + $0x78] sm:$0xff] %v180_v15  ;;  %v186_v18 = vld [vmem:[%s723_s25 + $0x210] sm:$0xff] }
  0x18   : > { %183 = vst [vmem:[%s728_s26 + $0x80] sm:$0xff] %v182_v16  ;;  %185 = vst [vmem:[%s728_s26 + $0x88] sm:$0xff] %v184_v17  ;;  %v188_v19 = vld [vmem:[%s723_s25 + $0x218] sm:$0xff]  ;;  %v190_v20 = vld [vmem:[%s723_s25 + $0x280] sm:$0xff] }
  0x19   : > { %187 = vst [vmem:[%s728_s26 + $0x90] sm:$0xff] %v186_v18  ;;  %189 = vst [vmem:[%s728_s26 + $0x98] sm:$0xff] %v188_v19  ;;  %v192_v21 = vld [vmem:[%s723_s25 + $0x288] sm:$0xff]  ;;  %v194_v22 = vld [vmem:[%s723_s25 + $0x290] sm:$0xff] }
  0x1a   : > { %191 = vst [vmem:[%s728_s26 + $0xa0] sm:$0xff] %v190_v20  ;;  %v196_v23 = vld [vmem:[%s723_s25 + $0x298] sm:$0xff]  ;;  %193 = vst [vmem:[%s728_s26 + $0xa8] sm:$0xff] %v192_v21  ;;  %v198_v24 = vld [vmem:[%s723_s25 + $0x300] sm:$0xff] }
  0x1b   : > { %195 = vst [vmem:[%s728_s26 + $0xb0] sm:$0xff] %v194_v22  ;;  %197 = vst [vmem:[%s728_s26 + $0xb8] sm:$0xff] %v196_v23  ;;  %v200_v25 = vld [vmem:[%s723_s25 + $0x308] sm:$0xff]  ;;  %v202_v26 = vld [vmem:[%s723_s25 + $0x310] sm:$0xff] }
  0x1c   : > { %199 = vst [vmem:[%s728_s26 + $0xc0] sm:$0xff] %v198_v24  ;;  %201 = vst [vmem:[%s728_s26 + $0xc8] sm:$0xff] %v200_v25  ;;  %v204_v27 = vld [vmem:[%s723_s25 + $0x318] sm:$0xff]  ;;  %v206_v28 = vld [vmem:[%s723_s25 + $0x380] sm:$0xff] }
  0x1d   : > { %203 = vst [vmem:[%s728_s26 + $0xd0] sm:$0xff] %v202_v26  ;;  %v208_v29 = vld [vmem:[%s723_s25 + $0x388] sm:$0xff]  ;;  %205 = vst [vmem:[%s728_s26 + $0xd8] sm:$0xff] %v204_v27  ;;  %v210_v30 = vld [vmem:[%s723_s25 + $0x390] sm:$0xff] }
  0x1e   : > { %207 = vst [vmem:[%s728_s26 + $0xe0] sm:$0xff] %v206_v28  ;;  %209 = vst [vmem:[%s728_s26 + $0xe8] sm:$0xff] %v208_v29  ;;  %v212_v31 = vld [vmem:[%s723_s25 + $0x398] sm:$0xff]  ;;  %v214_v32 = vld [vmem:[%s723_s25 + $0x400] sm:$0xff] }
  0x1f   : > { %211 = vst [vmem:[%s728_s26 + $0xf0] sm:$0xff] %v210_v30  ;;  %213 = vst [vmem:[%s728_s26 + $0xf8] sm:$0xff] %v212_v31  ;;  %v216_v33 = vld [vmem:[%s723_s25 + $0x408] sm:$0xff]  ;;  %v218_v34 = vld [vmem:[%s723_s25 + $0x410] sm:$0xff] }
  0x20   : > { %215 = vst [vmem:[%s728_s26 + $0x100] sm:$0xff] %v214_v32  ;;  %v220_v35 = vld [vmem:[%s723_s25 + $0x418] sm:$0xff]  ;;  %217 = vst [vmem:[%s728_s26 + $0x108] sm:$0xff] %v216_v33  ;;  %v222_v36 = vld [vmem:[%s723_s25 + $0x480] sm:$0xff] }
  0x21   : > { %219 = vst [vmem:[%s728_s26 + $0x110] sm:$0xff] %v218_v34  ;;  %221 = vst [vmem:[%s728_s26 + $0x118] sm:$0xff] %v220_v35  ;;  %v224_v37 = vld [vmem:[%s723_s25 + $0x488] sm:$0xff]  ;;  %v226_v38 = vld [vmem:[%s723_s25 + $0x490] sm:$0xff] }
  0x22   : > { %223 = vst [vmem:[%s728_s26 + $0x120] sm:$0xff] %v222_v36  ;;  %225 = vst [vmem:[%s728_s26 + $0x128] sm:$0xff] %v224_v37  ;;  %v228_v39 = vld [vmem:[%s723_s25 + $0x498] sm:$0xff]  ;;  %v230_v40 = vld [vmem:[%s723_s25 + $0x500] sm:$0xff] }
  0x23   : > { %227 = vst [vmem:[%s728_s26 + $0x130] sm:$0xff] %v226_v38  ;;  %v232_v41 = vld [vmem:[%s723_s25 + $0x508] sm:$0xff]  ;;  %229 = vst [vmem:[%s728_s26 + $0x138] sm:$0xff] %v228_v39  ;;  %v234_v42 = vld [vmem:[%s723_s25 + $0x510] sm:$0xff] }
  0x24   : > { %231 = vst [vmem:[%s728_s26 + $0x140] sm:$0xff] %v230_v40  ;;  %233 = vst [vmem:[%s728_s26 + $0x148] sm:$0xff] %v232_v41  ;;  %v236_v43 = vld [vmem:[%s723_s25 + $0x518] sm:$0xff]  ;;  %v238_v44 = vld [vmem:[%s723_s25 + $0x580] sm:$0xff] }
  0x25   : > { %235 = vst [vmem:[%s728_s26 + $0x150] sm:$0xff] %v234_v42  ;;  %237 = vst [vmem:[%s728_s26 + $0x158] sm:$0xff] %v236_v43  ;;  %v240_v45 = vld [vmem:[%s723_s25 + $0x588] sm:$0xff]  ;;  %v242_v46 = vld [vmem:[%s723_s25 + $0x590] sm:$0xff] }
  0x26   : > { %239 = vst [vmem:[%s728_s26 + $0x160] sm:$0xff] %v238_v44  ;;  %v244_v47 = vld [vmem:[%s723_s25 + $0x598] sm:$0xff]  ;;  %241 = vst [vmem:[%s728_s26 + $0x168] sm:$0xff] %v240_v45  ;;  %v246_v48 = vld [vmem:[%s723_s25 + $0x600] sm:$0xff] }
  0x27   : > { %243 = vst [vmem:[%s728_s26 + $0x170] sm:$0xff] %v242_v46  ;;  %245 = vst [vmem:[%s728_s26 + $0x178] sm:$0xff] %v244_v47  ;;  %v248_v49 = vld [vmem:[%s723_s25 + $0x608] sm:$0xff]  ;;  %v250_v50 = vld [vmem:[%s723_s25 + $0x610] sm:$0xff] }
  0x28   : > { %247 = vst [vmem:[%s728_s26 + $0x180] sm:$0xff] %v246_v48  ;;  %249 = vst [vmem:[%s728_s26 + $0x188] sm:$0xff] %v248_v49  ;;  %v252_v51 = vld [vmem:[%s723_s25 + $0x618] sm:$0xff]  ;;  %v254_v52 = vld [vmem:[%s723_s25 + $0x680] sm:$0xff] }
  0x29   : > { %251 = vst [vmem:[%s728_s26 + $0x190] sm:$0xff] %v250_v50  ;;  %v256_v53 = vld [vmem:[%s723_s25 + $0x688] sm:$0xff]  ;;  %253 = vst [vmem:[%s728_s26 + $0x198] sm:$0xff] %v252_v51  ;;  %v258_v54 = vld [vmem:[%s723_s25 + $0x690] sm:$0xff] }
  0x2a   : > { %255 = vst [vmem:[%s728_s26 + $0x1a0] sm:$0xff] %v254_v52  ;;  %257 = vst [vmem:[%s728_s26 + $0x1a8] sm:$0xff] %v256_v53  ;;  %v260_v55 = vld [vmem:[%s723_s25 + $0x698] sm:$0xff]  ;;  %v262_v56 = vld [vmem:[%s723_s25 + $0x700] sm:$0xff] }
  0x2b   : > { %259 = vst [vmem:[%s728_s26 + $0x1b0] sm:$0xff] %v258_v54  ;;  %261 = vst [vmem:[%s728_s26 + $0x1b8] sm:$0xff] %v260_v55  ;;  %v264_v57 = vld [vmem:[%s723_s25 + $0x708] sm:$0xff]  ;;  %v266_v58 = vld [vmem:[%s723_s25 + $0x710] sm:$0xff] }
  0x2c   : > { %263 = vst [vmem:[%s728_s26 + $0x1c0] sm:$0xff] %v262_v56  ;;  %v268_v59 = vld [vmem:[%s723_s25 + $0x718] sm:$0xff]  ;;  %265 = vst [vmem:[%s728_s26 + $0x1c8] sm:$0xff] %v264_v57  ;;  %v270_v60 = vld [vmem:[%s723_s25 + $0x780] sm:$0xff] }
  0x2d   : > { %267 = vst [vmem:[%s728_s26 + $0x1d0] sm:$0xff] %v266_v58  ;;  %269 = vst [vmem:[%s728_s26 + $0x1d8] sm:$0xff] %v268_v59  ;;  %v272_v61 = vld [vmem:[%s723_s25 + $0x788] sm:$0xff]  ;;  %v274_v62 = vld [vmem:[%s723_s25 + $0x790] sm:$0xff] }
  0x2e   : > { %271 = vst [vmem:[%s728_s26 + $0x1e0] sm:$0xff] %v270_v60  ;;  %273 = vst [vmem:[%s728_s26 + $0x1e8] sm:$0xff] %v272_v61  ;;  %v276_v63 = vld [vmem:[%s723_s25 + $0x798] sm:$0xff] }
  0x2f   : > { %275 = vst [vmem:[%s728_s26 + $0x1f0] sm:$0xff] %v274_v62  ;;  %277 = vst [vmem:[%s728_s26 + $0x1f8] sm:$0xff] %v276_v63 }
  0x30 PF: > { %p609_p5 = scmp.ge.s32.totalorder %s665_s14, 1  ;;  %p282_p6 = scmp.lt.s32.totalorder %s665_s14, 5 }
  0x32   : > { %p283_p7 = pnand %p609_p5, %p282_p6 }
  0x33   : > { %s289_s27 = sand.u32 (!%p283_p7), 1, %s657_s12   ;;  %s611_s7 = sshll.u32 (!%p283_p7), %s602_s15, 2 }
  0x34   : > { %286 = sbr.rel (%p283_p7) target bundleno = 292 (0x124), region = 51  ;;  %s610_s30 = sshll.u32 (!%p283_p7), %s289_s27, 9 }
  0x35   : > { %s861_s4 = scalar_lea.vmem (!%p283_p7), [#allocation2], %s610_s30  ;;  %p314_p8 = scmp.lt.s32.totalorder (!%p283_p7), %s611_s7, 15 }
  0x39   : > { %v384_v0 = vld [vmem:[%s947_s2] sm:$0xff]  ;;  %v667_v1 = vmov 0.0   ;;  %v668_v2 = vmov 0   ;;  %v381_v3 = vld [vmem:[%s861_s4 + $0x1e8] sm:$0xff]  ;;  %v383_v4 = vld [vmem:[%s861_s4 + $0x1f8] sm:$0xff]  ;;  %s953_s7 = smov (!%p314_p8, %s611_s7), 15 }
  0x3a   : > { %454 = vmatprep.mubr.f32.mxu0 %v667_v1  ;;  %525 = vmatprep.mubr.f32.mxu1 %v667_v1  ;;  %v380_v5 = vld [vmem:[%s861_s4 + $0x1e0] sm:$0xff]  ;;  %v382_v6 = vld [vmem:[%s861_s4 + $0x1f0] sm:$0xff]  ;;  %v377_v7 = vld [vmem:[%s861_s4 + $0x1c8] sm:$0xff]  ;;  %s612_s8 = sshll.u32 %s953_s7, 3 }
  0x3b   : > { %642 = vset.pattern.permute.xlu0 %v668_v2  ;;  %390 = vmatprep.subr.mxu0 %v381_v3  ;;  %v379_v8 = vld [vmem:[%s861_s4 + $0x1d8] sm:$0xff]  ;;  %v376_v9 = vld [vmem:[%s861_s4 + $0x1c0] sm:$0xff]  ;;  %v378_v10 = vld [vmem:[%s861_s4 + $0x1d0] sm:$0xff]  ;;  %s317_s11 = scalar_lea.vmem %s948_s3, %s612_s8 }
  0x3c   : > { %387 = vperm.xlu0 %642, %v384_v0   ;;  %461 = vmatprep.subr.mxu1 %v383_v4  ;;  %v373_v11 = vld [vmem:[%s861_s4 + $0x1a8] sm:$0xff]  ;;  %v375_v12 = vld [vmem:[%s861_s4 + $0x1b8] sm:$0xff]  ;;  %v372_v13 = vld [vmem:[%s861_s4 + $0x1a0] sm:$0xff] }
  0x3d   : > { %391 = vmatpush1.msra.mxu0 %v380_v5  ;;  %462 = vmatpush1.msra.mxu1 %v382_v6  ;;  %v374_v14 = vld [vmem:[%s861_s4 + $0x1b0] sm:$0xff]  ;;  %v369_v15 = vld [vmem:[%s861_s4 + $0x188] sm:$0xff]  ;;  %v371_v16 = vld [vmem:[%s861_s4 + $0x198] sm:$0xff] }
  0x3e   : > { %392 = vmatprep.subr.mxu0 %v377_v7  ;;  %463 = vmatprep.subr.mxu1 %v379_v8  ;;  %v368_v17 = vld [vmem:[%s861_s4 + $0x180] sm:$0xff]  ;;  %v370_v18 = vld [vmem:[%s861_s4 + $0x190] sm:$0xff]  ;;  %v365_v19 = vld [vmem:[%s861_s4 + $0x168] sm:$0xff] }
  0x3f   : > { %393 = vmatpush1.msra.mxu0 %v376_v9  ;;  %464 = vmatpush1.msra.mxu1 %v378_v10  ;;  %v367_v20 = vld [vmem:[%s861_s4 + $0x178] sm:$0xff]  ;;  %v364_v21 = vld [vmem:[%s861_s4 + $0x160] sm:$0xff]  ;;  %v366_v22 = vld [vmem:[%s861_s4 + $0x170] sm:$0xff] }
  0x40   : > { %394 = vmatprep.subr.mxu0 %v373_v11  ;;  %465 = vmatprep.subr.mxu1 %v375_v12  ;;  %v361_v23 = vld [vmem:[%s861_s4 + $0x148] sm:$0xff]  ;;  %v363_v24 = vld [vmem:[%s861_s4 + $0x158] sm:$0xff]  ;;  %v360_v25 = vld [vmem:[%s861_s4 + $0x140] sm:$0xff] }
  0x41   : > { %395 = vmatpush1.msra.mxu0 %v372_v13  ;;  %466 = vmatpush1.msra.mxu1 %v374_v14  ;;  %v362_v26 = vld [vmem:[%s861_s4 + $0x150] sm:$0xff]  ;;  %v357_v27 = vld [vmem:[%s861_s4 + $0x128] sm:$0xff]  ;;  %v359_v28 = vld [vmem:[%s861_s4 + $0x138] sm:$0xff] }
  0x42   : > { %396 = vmatprep.subr.mxu0 %v369_v15  ;;  %467 = vmatprep.subr.mxu1 %v371_v16  ;;  %v356_v29 = vld [vmem:[%s861_s4 + $0x120] sm:$0xff]  ;;  %v358_v30 = vld [vmem:[%s861_s4 + $0x130] sm:$0xff]  ;;  %v353_v31 = vld [vmem:[%s861_s4 + $0x108] sm:$0xff] }
  0x43   : > { %397 = vmatpush1.msra.mxu0 %v368_v17  ;;  %468 = vmatpush1.msra.mxu1 %v370_v18  ;;  %v355_v32 = vld [vmem:[%s861_s4 + $0x118] sm:$0xff]  ;;  %v352_v33 = vld [vmem:[%s861_s4 + $0x100] sm:$0xff]  ;;  %v354_v34 = vld [vmem:[%s861_s4 + $0x110] sm:$0xff] }
  0x44   : > { %398 = vmatprep.subr.mxu0 %v365_v19  ;;  %469 = vmatprep.subr.mxu1 %v367_v20  ;;  %v349_v35 = vld [vmem:[%s861_s4 + $0xe8] sm:$0xff]  ;;  %v351_v36 = vld [vmem:[%s861_s4 + $0xf8] sm:$0xff]  ;;  %v348_v37 = vld [vmem:[%s861_s4 + $0xe0] sm:$0xff] }
  0x45   : > { %399 = vmatpush1.msra.mxu0 %v364_v21  ;;  %470 = vmatpush1.msra.mxu1 %v366_v22  ;;  %v350_v38 = vld [vmem:[%s861_s4 + $0xf0] sm:$0xff]  ;;  %v345_v39 = vld [vmem:[%s861_s4 + $0xc8] sm:$0xff]  ;;  %v347_v40 = vld [vmem:[%s861_s4 + $0xd8] sm:$0xff] }
  0x46   : > { %400 = vmatprep.subr.mxu0 %v361_v23  ;;  %471 = vmatprep.subr.mxu1 %v363_v24  ;;  %v344_v41 = vld [vmem:[%s861_s4 + $0xc0] sm:$0xff]  ;;  %v346_v42 = vld [vmem:[%s861_s4 + $0xd0] sm:$0xff]  ;;  %v341_v43 = vld [vmem:[%s861_s4 + $0xa8] sm:$0xff] }
  0x47   : > { %401 = vmatpush1.msra.mxu0 %v360_v25  ;;  %472 = vmatpush1.msra.mxu1 %v362_v26  ;;  %v343_v44 = vld [vmem:[%s861_s4 + $0xb8] sm:$0xff]  ;;  %v340_v45 = vld [vmem:[%s861_s4 + $0xa0] sm:$0xff]  ;;  %v342_v46 = vld [vmem:[%s861_s4 + $0xb0] sm:$0xff] }
  0x48   : > { %402 = vmatprep.subr.mxu0 %v357_v27  ;;  %473 = vmatprep.subr.mxu1 %v359_v28  ;;  %v337_v47 = vld [vmem:[%s861_s4 + $0x88] sm:$0xff]  ;;  %v339_v48 = vld [vmem:[%s861_s4 + $0x98] sm:$0xff]  ;;  %v336_v49 = vld [vmem:[%s861_s4 + $0x80] sm:$0xff] }
  0x49   : > { %403 = vmatpush1.msra.mxu0 %v356_v29  ;;  %474 = vmatpush1.msra.mxu1 %v358_v30  ;;  %v338_v50 = vld [vmem:[%s861_s4 + $0x90] sm:$0xff]  ;;  %v333_v51 = vld [vmem:[%s861_s4 + $0x68] sm:$0xff]  ;;  %v335_v52 = vld [vmem:[%s861_s4 + $0x78] sm:$0xff] }
  0x4a   : > { %404 = vmatprep.subr.mxu0 %v353_v31  ;;  %475 = vmatprep.subr.mxu1 %v355_v32  ;;  %v332_v53 = vld [vmem:[%s861_s4 + $0x60] sm:$0xff]  ;;  %v334_v54 = vld [vmem:[%s861_s4 + $0x70] sm:$0xff]  ;;  %v329_v55 = vld [vmem:[%s861_s4 + $0x48] sm:$0xff] }
  0x4b   : > { %405 = vmatpush1.msra.mxu0 %v352_v33  ;;  %476 = vmatpush1.msra.mxu1 %v354_v34  ;;  %v331_v56 = vld [vmem:[%s861_s4 + $0x58] sm:$0xff]  ;;  %v328_v57 = vld [vmem:[%s861_s4 + $0x40] sm:$0xff]  ;;  %v330_v58 = vld [vmem:[%s861_s4 + $0x50] sm:$0xff] }
  0x4c   : > { %406 = vmatprep.subr.mxu0 %v349_v35  ;;  %477 = vmatprep.subr.mxu1 %v351_v36  ;;  %v325_v59 = vld [vmem:[%s861_s4 + $0x28] sm:$0xff]  ;;  %v327_v60 = vld [vmem:[%s861_s4 + $0x38] sm:$0xff]  ;;  %v324_v61 = vld [vmem:[%s861_s4 + $0x20] sm:$0xff] }
  0x4d   : > { %407 = vmatpush1.msra.mxu0 %v348_v37  ;;  %478 = vmatpush1.msra.mxu1 %v350_v38  ;;  %v326_v62 = vld [vmem:[%s861_s4 + $0x30] sm:$0xff]  ;;  %v321_v63 = vld [vmem:[%s861_s4 + $0x8] sm:$0xff]  ;;  %v323_v0 = vld [vmem:[%s861_s4 + $0x18] sm:$0xff] }
  0x4e   : > { %408 = vmatprep.subr.mxu0 %v345_v39  ;;  %479 = vmatprep.subr.mxu1 %v347_v40  ;;  %v320_v1 = vld [vmem:[%s861_s4] sm:$0xff]  ;;  %v322_v2 = vld [vmem:[%s861_s4 + $0x10] sm:$0xff] }
  0x4f   : > { %409 = vmatpush1.msra.mxu0 %v344_v41  ;;  %480 = vmatpush1.msra.mxu1 %v346_v42  ;;  %v319_v3 = vld [vmem:[%s945_s0] sm:$0xff] }
  0x50   : > { %410 = vmatprep.subr.mxu0 %v341_v43  ;;  %481 = vmatprep.subr.mxu1 %v343_v44 }
  0x51   : > { %411 = vmatpush1.msra.mxu0 %v340_v45  ;;  %482 = vmatpush1.msra.mxu1 %v342_v46 }
  0x52   : > { %412 = vmatprep.subr.mxu0 %v337_v47  ;;  %483 = vmatprep.subr.mxu1 %v339_v48 }
  0x53   : > { %413 = vmatpush1.msra.mxu0 %v336_v49  ;;  %484 = vmatpush1.msra.mxu1 %v338_v50 }
  0x54   : > { %414 = vmatprep.subr.mxu0 %v333_v51  ;;  %485 = vmatprep.subr.mxu1 %v335_v52 }
  0x55   : > { %415 = vmatpush1.msra.mxu0 %v332_v53  ;;  %486 = vmatpush1.msra.mxu1 %v334_v54 }
  0x56   : > { %416 = vmatprep.subr.mxu0 %v329_v55  ;;  %487 = vmatprep.subr.mxu1 %v331_v56 }
  0x57   : > { %417 = vmatpush1.msra.mxu0 %v328_v57  ;;  %488 = vmatpush1.msra.mxu1 %v330_v58 }
  0x58   : > { %418 = vmatprep.subr.mxu0 %v325_v59  ;;  %489 = vmatprep.subr.mxu1 %v327_v60 }
  0x59   : > { %419 = vmatpush1.msra.mxu0 %v324_v61  ;;  %490 = vmatpush1.msra.mxu1 %v326_v62 }
  0x5a   : > { %420 = vmatprep.subr.mxu0 %v321_v63  ;;  %491 = vmatprep.subr.mxu1 %v323_v0 }
  0x5b   : > { %421 = vmatpush1.msra.mxu0 %v320_v1  ;;  %492 = vmatpush1.msra.mxu1 %v322_v2 }
  0x5c   : > { %455 = vmatmul.mubr.f32.vlgmr.msra.gmra.mxu0 %v319_v3  ;;  %526 = vmatmul.mubr.f32.vlgmr.msra.gmra.mxu1 %v319_v3 }
  0xb7   : > { %v388_v4 = vpop.permute.xlu0 %387 }
 0x11c   : > { %v456_v5 = vpop.f32.mrf.mxu0  ;;  %v527_v6 = vpop.f32.mrf.mxu1 }
 0x11d   : > { %v457_v7 = vadd.f32 %v456_v5, %v388_v4  ;;  %v528_v8 = vadd.f32 %v527_v6, %v388_v4 }
 0x11e   : > { %v458_v9 = vpop.f32.mrf.mxu0  ;;  %v529_v10 = vpop.f32.mrf.mxu1 }
 0x11f   : > { %v532_v11 = vmax.f32 %v457_v7, 0.0  ;;  %v534_v12 = vmax.f32 %v528_v8, 0.0  ;;  %v459_v13 = vadd.f32 %v458_v9, %v388_v4  ;;  %v530_v14 = vadd.f32 %v529_v10, %v388_v4 }
 0x121   : > { %536 = vst [vmem:[%s317_s11] sm:$0xff] %v532_v11  ;;  %538 = vst [vmem:[%s317_s11 + $0x10] sm:$0xff] %v534_v12  ;;  %v533_v15 = vmax.f32 %v459_v13, 0.0  ;;  %v535_v16 = vmax.f32 %v530_v14, 0.0 }
 0x123   : > { %537 = vst [vmem:[%s317_s11 + $0x8] sm:$0xff] %v533_v15  ;;  %539 = vst [vmem:[%s317_s11 + $0x18] sm:$0xff] %v535_v16 }
 0x124 PF: > { %p10_p9 = scmp.ge.s32.totalorder %s706_s16, 6   ;;  %s949_s12 = smov %s661_s13 }
 0x125   : > { %s950_s13 = smov %s715_s19  ;;  %s951_s14 = smov %s706_s16 }
 0x126   :  { %12 = sbr.rel (!%p10_p9) target bundleno = 2 (0x2), region = 90 }

// kernel: lpnet_forward.10
= control target key start
LH: loop header
LB: loop body
LE: loop exit
PB: predicated region body
PF: predicated region fallthrough
CT: control target
= control target key end

     0   :  { %s328_s6 = smov 0   ;;  %s369_s0 = inlined_call_operand.vmem [shape: f32[3,41,41], index: 0, kind: input, shape index: {}]   ;;  %s370_s1 = inlined_call_operand.vmem [shape: f32[3,39,39], index: 1, kind: output, shape index: {}]  }
   0x1 LB: > { %s287_s7 = sadd.s32 4294967295, %s314_s6   ;;  %p291_p0 = scmp.ge.s32.totalorder %s314_s6, 1  ;;  %s314_s6 = sphi %s328_s6, %s11_s6  }
   0x2   : > { %p87_p1 = scmp.lt.s32.totalorder %s314_s6, 4 }
   0x4   : > { %p88_p2 = pnand %p291_p0, %p87_p1 }
   0x5   : > { %p107_p3 = scmp.lt.s32.totalorder (!%p88_p2), %s287_s7, 2  ;;  %s316_s12 = smov (!%p88_p2), 127  }
   0x6   : > { %91 = sbr.rel (%p88_p2) target bundleno = 161 (0xa1), region = 24  ;;  %s317_s13 = smov (!%p88_p2), 126  }
   0xb   : > { %s372_s7 = smov (!%p107_p3, %s287_s7), 2  ;;  %vm182_vm0 = vcmask 1046528   ;;  %vm203_vm1 = vcmask 1045504   ;;  %vm225_vm2 = vcmask 318464   ;;  %vm230_vm3 = vcmask 317440  }
   0xc   : > { %s296_s8 = smul.u32 48, %s372_s7 }
   0xd   : > { %s297_s14 = smul.u32 40, %s372_s7 }
   0xe   : > { %s111_s11 = scalar_lea.vmem %s369_s0, %s296_s8 }
   0xf   : > { %v119_v0 = vld [vmem:[%s111_s11 + $0x10] sm:$0xff]  ;;  %v117_v1 = vld [vmem:[%s111_s11] sm:$0xff]  ;;  %v120_v2 = vld [vmem:[%s111_s11 + $0x18] sm:$0xff]  ;;  %s348_s17 = scalar_lea.vmem %s370_s1, %s297_s14 }
  0x10   : > { %133 = vrot.lane.b32.xlu1 %v119_v0, %s316_s12  ;;  %129 = vrot.lane.b32.xlu0 %v117_v1, %s316_s12  ;;  %v118_v3 = vld [vmem:[%s111_s11 + $0x8] sm:$0xff]  ;;  %v121_v5 = vld [vmem:[%s111_s11 + $0x20] sm:$0xff] }
  0x11   : > { %v122_v4 = vld [vmem:[%s111_s11 + $0x28] sm:$0x1] }
  0x14   : > { %135 = vrot.lane.b32.xlu1 %v120_v2, %s316_s12  ;;  %131 = vrot.lane.b32.xlu0 %v118_v3, %s316_s12 }
  0x18   : > { %139 = vrot.lane.b32.xlu1 %v122_v4, %s316_s12  ;;  %137 = vrot.lane.b32.xlu0 %v121_v5, %s316_s12 }
  0x1c   : > { %155 = vrot.lane.b32.xlu1 %v118_v3, %s317_s13  ;;  %153 = vrot.lane.b32.xlu0 %v117_v1, %s317_s13 }
  0x20   : > { %159 = vrot.lane.b32.xlu1 %v120_v2, %s317_s13  ;;  %157 = vrot.lane.b32.xlu0 %v119_v0, %s317_s13 }
  0x24   : > { %163 = vrot.lane.b32.xlu1 %v122_v4, %s317_s13  ;;  %161 = vrot.lane.b32.xlu0 %v121_v5, %s317_s13 }
  0x82   : > { %v134_v6 = vpop.permute.xlu1 %133  ;;  %v130_v7 = vpop.permute.xlu0 %129 }
  0x83   : > { %v147_v12 = vmax.f32 %v117_v1, %v130_v7  ;;  %v149_v18 = vmax.f32 %v119_v0, %v134_v6 }
  0x86   : > { %v136_v8 = vpop.permute.xlu1 %135  ;;  %v132_v9 = vpop.permute.xlu0 %131 }
  0x87   : > { %v148_v13 = vmax.f32 %v118_v3, %v132_v9  ;;  %v150_v19 = vmax.f32 %v120_v2, %v136_v8 }
  0x8a   : > { %v140_v10 = vpop.permute.xlu1 %139  ;;  %v138_v11 = vpop.permute.xlu0 %137 }
  0x8b   : > { %v152_v35 = vmax.f32 %v122_v4, %v140_v10  ;;  %v151_v36 = vmax.f32 %v121_v5, %v138_v11 }
  0x8e   : > { %v156_v14 = vpop.permute.xlu1 %155  ;;  %v154_v15 = vpop.permute.xlu0 %153 }
  0x8f   : > { %v172_v16 = vmax.f32 %v148_v13, %v156_v14  ;;  %v171_v17 = vmax.f32 %v147_v12, %v154_v15 }
  0x91   : > { %v184_v20 = vrot.slane %v172_v16, 1  ;;  %v205_v21 = vrot.slane %v172_v16, 2  ;;  %v183_v22 = vrot.slane %v171_v17, 1  ;;  %v204_v23 = vrot.slane %v171_v17, 2 }
  0x92   : > { %v160_v24 = vpop.permute.xlu1 %159  ;;  %v158_v25 = vpop.permute.xlu0 %157 }
  0x93   : > { %v185_v26 = vsel %vm182_vm0, %v183_v22, %v184_v20  ;;  %v174_v27 = vmax.f32 %v150_v19, %v160_v24  ;;  %v173_v28 = vmax.f32 %v149_v18, %v158_v25  ;;  %v206_v30 = vsel %vm203_vm1, %v204_v23, %v205_v21 }
  0x94   : > { %v197_v29 = vmax.f32 %v171_v17, %v185_v26 }
  0x95   : > { %v188_v31 = vrot.slane %v174_v27, 1  ;;  %v209_v32 = vrot.slane %v174_v27, 2  ;;  %v186_v33 = vrot.slane %v173_v28, 1  ;;  %v207_v34 = vrot.slane %v173_v28, 2 }
  0x96   : > { %v220_v37 = vmax.f32 %v197_v29, %v206_v30  ;;  %v164_v38 = vpop.permute.xlu1 %163  ;;  %v162_v39 = vpop.permute.xlu0 %161 }
  0x97   : > { %v187_v40 = vsel %vm182_vm0, %v184_v20, %v186_v33  ;;  %v189_v41 = vsel %vm182_vm0, %v186_v33, %v188_v31  ;;  %v176_v44 = vmax.f32 %v152_v35, %v164_v38  ;;  %v175_v45 = vmax.f32 %v151_v36, %v162_v39 }
  0x98   : > { %226 = vst.msk [vmem:[%s348_s17] sm:$0xff] %vm225_vm2, %v220_v37  ;;  %v198_v42 = vmax.f32 %v172_v16, %v187_v40  ;;  %v199_v43 = vmax.f32 %v173_v28, %v189_v41  ;;  %v208_v46 = vsel %vm203_vm1, %v205_v21, %v207_v34  ;;  %v210_v47 = vsel %vm203_vm1, %v207_v34, %v209_v32 }
  0x99   : > { %v213_v50 = vrot.slane %v176_v44, 2  ;;  %v190_v51 = vrot.slane %v175_v45, 1  ;;  %v211_v52 = vrot.slane %v175_v45, 2 }
  0x9a   : > { %v221_v48 = vmax.f32 %v198_v42, %v208_v46  ;;  %v222_v49 = vmax.f32 %v199_v43, %v210_v47 }
  0x9b   : > { %v191_v53 = vsel %vm182_vm0, %v188_v31, %v190_v51  ;;  %v201_v54 = vmax.f32 %v175_v45, %v190_v51  ;;  %v214_v56 = vsel %vm203_vm1, %v211_v52, %v213_v50  ;;  %v212_v57 = vsel %vm203_vm1, %v209_v32, %v211_v52 }
  0x9c   : > { %227 = vst.msk [vmem:[%s348_s17 + $0x8] sm:$0xff] %vm225_vm2, %v221_v48  ;;  %228 = vst.msk [vmem:[%s348_s17 + $0x10] sm:$0xff] %vm225_vm2, %v222_v49  ;;  %v200_v55 = vmax.f32 %v174_v27, %v191_v53 }
  0x9d   : > { %v224_v58 = vmax.f32 %v201_v54, %v214_v56 }
  0x9e   : > { %v223_v59 = vmax.f32 %v200_v55, %v212_v57 }
  0x9f   : > { %231 = vst.msk [vmem:[%s348_s17 + $0x20] sm:$0x7f] %vm230_vm3, %v224_v58 }
  0xa0   : > { %229 = vst.msk [vmem:[%s348_s17 + $0x18] sm:$0xff] %vm225_vm2, %v223_v59 }
  0xa1 PF: > { %s11_s6 = sadd.s32 1, %s314_s6  }
  0xa2   : > { %p8_p4 = scmp.ge.s32.totalorder %s11_s6, 5  }
  0xa4   :  { %10 = sbr.rel (!%p8_p4) target bundleno = 1 (0x1), region = 54 }

// kernel: lpnet_forward.11
= control target key start
LH: loop header
LB: loop body
LE: loop exit
PB: predicated region body
PF: predicated region fallthrough
CT: control target
= control target key end

     0   :  { %v242_v3 = vmov 0.0   ;;  %s474_s1 = inlined_call_operand.vmem [shape: f32[128,512], index: 1, kind: input, shape index: {}]   ;;  %s475_s0 = inlined_call_operand.vmem [shape: f32[8,128], index: 0, kind: input, shape index: {}]   ;;  %s476_s2 = inlined_call_operand.vmem [shape: f32[8,1], index: 2, kind: input, shape index: {}]   ;;  %s477_s3 = inlined_call_operand.vmem [shape: f32[8,512], index: 3, kind: output, shape index: {}]  }
   0x1   :  { %v76_v0 = vld [vmem:[%s474_s1 + $0x1e8] sm:$0xff]  ;;  %v78_v1 = vld [vmem:[%s474_s1 + $0x1f8] sm:$0xff]  ;;  %v75_v2 = vld [vmem:[%s474_s1 + $0x1e0] sm:$0xff]  ;;  %149 = vmatprep.mubr.f32.mxu0 %v242_v3  ;;  %220 = vmatprep.mubr.f32.mxu1 %v242_v3  ;;  %v243_v3 = vmov 0  }
   0x2   :  { %85 = vmatprep.subr.mxu0 %v76_v0  ;;  %156 = vmatprep.subr.mxu1 %v78_v1  ;;  %v77_v4 = vld [vmem:[%s474_s1 + $0x1f0] sm:$0xff]  ;;  %v72_v5 = vld [vmem:[%s474_s1 + $0x1c8] sm:$0xff]  ;;  %v74_v6 = vld [vmem:[%s474_s1 + $0x1d8] sm:$0xff] }
   0x3   :  { %86 = vmatpush1.msra.mxu0 %v75_v2  ;;  %157 = vmatpush1.msra.mxu1 %v77_v4  ;;  %v71_v7 = vld [vmem:[%s474_s1 + $0x1c0] sm:$0xff]  ;;  %v73_v8 = vld [vmem:[%s474_s1 + $0x1d0] sm:$0xff]  ;;  %v68_v9 = vld [vmem:[%s474_s1 + $0x1a8] sm:$0xff] }
   0x4   :  { %87 = vmatprep.subr.mxu0 %v72_v5  ;;  %158 = vmatprep.subr.mxu1 %v74_v6  ;;  %v70_v10 = vld [vmem:[%s474_s1 + $0x1b8] sm:$0xff]  ;;  %v67_v11 = vld [vmem:[%s474_s1 + $0x1a0] sm:$0xff]  ;;  %v69_v12 = vld [vmem:[%s474_s1 + $0x1b0] sm:$0xff] }
   0x5   :  { %88 = vmatpush1.msra.mxu0 %v71_v7  ;;  %159 = vmatpush1.msra.mxu1 %v73_v8  ;;  %v64_v13 = vld [vmem:[%s474_s1 + $0x188] sm:$0xff]  ;;  %v66_v14 = vld [vmem:[%s474_s1 + $0x198] sm:$0xff]  ;;  %v63_v15 = vld [vmem:[%s474_s1 + $0x180] sm:$0xff] }
   0x6   :  { %89 = vmatprep.subr.mxu0 %v68_v9  ;;  %160 = vmatprep.subr.mxu1 %v70_v10  ;;  %v65_v16 = vld [vmem:[%s474_s1 + $0x190] sm:$0xff]  ;;  %v60_v17 = vld [vmem:[%s474_s1 + $0x168] sm:$0xff]  ;;  %v62_v18 = vld [vmem:[%s474_s1 + $0x178] sm:$0xff] }
   0x7   :  { %90 = vmatpush1.msra.mxu0 %v67_v11  ;;  %161 = vmatpush1.msra.mxu1 %v69_v12  ;;  %v59_v19 = vld [vmem:[%s474_s1 + $0x160] sm:$0xff]  ;;  %v61_v20 = vld [vmem:[%s474_s1 + $0x170] sm:$0xff]  ;;  %v56_v21 = vld [vmem:[%s474_s1 + $0x148] sm:$0xff] }
   0x8   :  { %91 = vmatprep.subr.mxu0 %v64_v13  ;;  %162 = vmatprep.subr.mxu1 %v66_v14  ;;  %v58_v22 = vld [vmem:[%s474_s1 + $0x158] sm:$0xff]  ;;  %v55_v23 = vld [vmem:[%s474_s1 + $0x140] sm:$0xff]  ;;  %v57_v24 = vld [vmem:[%s474_s1 + $0x150] sm:$0xff] }
   0x9   :  { %92 = vmatpush1.msra.mxu0 %v63_v15  ;;  %163 = vmatpush1.msra.mxu1 %v65_v16  ;;  %v52_v25 = vld [vmem:[%s474_s1 + $0x128] sm:$0xff]  ;;  %v54_v26 = vld [vmem:[%s474_s1 + $0x138] sm:$0xff]  ;;  %v51_v27 = vld [vmem:[%s474_s1 + $0x120] sm:$0xff] }
   0xa   :  { %93 = vmatprep.subr.mxu0 %v60_v17  ;;  %164 = vmatprep.subr.mxu1 %v62_v18  ;;  %v53_v28 = vld [vmem:[%s474_s1 + $0x130] sm:$0xff]  ;;  %v48_v29 = vld [vmem:[%s474_s1 + $0x108] sm:$0xff]  ;;  %v50_v30 = vld [vmem:[%s474_s1 + $0x118] sm:$0xff] }
   0xb   :  { %94 = vmatpush1.msra.mxu0 %v59_v19  ;;  %165 = vmatpush1.msra.mxu1 %v61_v20  ;;  %v47_v31 = vld [vmem:[%s474_s1 + $0x100] sm:$0xff]  ;;  %v49_v32 = vld [vmem:[%s474_s1 + $0x110] sm:$0xff]  ;;  %v44_v33 = vld [vmem:[%s474_s1 + $0xe8] sm:$0xff] }
   0xc   :  { %95 = vmatprep.subr.mxu0 %v56_v21  ;;  %166 = vmatprep.subr.mxu1 %v58_v22  ;;  %v46_v34 = vld [vmem:[%s474_s1 + $0xf8] sm:$0xff]  ;;  %v43_v35 = vld [vmem:[%s474_s1 + $0xe0] sm:$0xff]  ;;  %v45_v36 = vld [vmem:[%s474_s1 + $0xf0] sm:$0xff] }
   0xd   :  { %96 = vmatpush1.msra.mxu0 %v55_v23  ;;  %167 = vmatpush1.msra.mxu1 %v57_v24  ;;  %v40_v37 = vld [vmem:[%s474_s1 + $0xc8] sm:$0xff]  ;;  %v42_v38 = vld [vmem:[%s474_s1 + $0xd8] sm:$0xff]  ;;  %v39_v39 = vld [vmem:[%s474_s1 + $0xc0] sm:$0xff] }
   0xe   :  { %97 = vmatprep.subr.mxu0 %v52_v25  ;;  %168 = vmatprep.subr.mxu1 %v54_v26  ;;  %v41_v40 = vld [vmem:[%s474_s1 + $0xd0] sm:$0xff]  ;;  %v36_v41 = vld [vmem:[%s474_s1 + $0xa8] sm:$0xff]  ;;  %v38_v42 = vld [vmem:[%s474_s1 + $0xb8] sm:$0xff] }
   0xf   :  { %98 = vmatpush1.msra.mxu0 %v51_v27  ;;  %169 = vmatpush1.msra.mxu1 %v53_v28  ;;  %v35_v43 = vld [vmem:[%s474_s1 + $0xa0] sm:$0xff]  ;;  %v37_v44 = vld [vmem:[%s474_s1 + $0xb0] sm:$0xff]  ;;  %v32_v45 = vld [vmem:[%s474_s1 + $0x88] sm:$0xff] }
  0x10   :  { %99 = vmatprep.subr.mxu0 %v48_v29  ;;  %170 = vmatprep.subr.mxu1 %v50_v30  ;;  %v34_v46 = vld [vmem:[%s474_s1 + $0x98] sm:$0xff]  ;;  %v31_v47 = vld [vmem:[%s474_s1 + $0x80] sm:$0xff]  ;;  %v33_v48 = vld [vmem:[%s474_s1 + $0x90] sm:$0xff] }
  0x11   :  { %100 = vmatpush1.msra.mxu0 %v47_v31  ;;  %171 = vmatpush1.msra.mxu1 %v49_v32  ;;  %v28_v49 = vld [vmem:[%s474_s1 + $0x68] sm:$0xff]  ;;  %v30_v50 = vld [vmem:[%s474_s1 + $0x78] sm:$0xff]  ;;  %v27_v51 = vld [vmem:[%s474_s1 + $0x60] sm:$0xff] }
  0x12   :  { %101 = vmatprep.subr.mxu0 %v44_v33  ;;  %172 = vmatprep.subr.mxu1 %v46_v34  ;;  %v29_v52 = vld [vmem:[%s474_s1 + $0x70] sm:$0xff]  ;;  %v24_v53 = vld [vmem:[%s474_s1 + $0x48] sm:$0xff]  ;;  %v26_v54 = vld [vmem:[%s474_s1 + $0x58] sm:$0xff] }
  0x13   :  { %102 = vmatpush1.msra.mxu0 %v43_v35  ;;  %173 = vmatpush1.msra.mxu1 %v45_v36  ;;  %v23_v55 = vld [vmem:[%s474_s1 + $0x40] sm:$0xff]  ;;  %v25_v56 = vld [vmem:[%s474_s1 + $0x50] sm:$0xff]  ;;  %v20_v57 = vld [vmem:[%s474_s1 + $0x28] sm:$0xff] }
  0x14   :  { %103 = vmatprep.subr.mxu0 %v40_v37  ;;  %174 = vmatprep.subr.mxu1 %v42_v38  ;;  %v22_v58 = vld [vmem:[%s474_s1 + $0x38] sm:$0xff]  ;;  %v19_v59 = vld [vmem:[%s474_s1 + $0x20] sm:$0xff]  ;;  %v21_v60 = vld [vmem:[%s474_s1 + $0x30] sm:$0xff] }
  0x15   :  { %104 = vmatpush1.msra.mxu0 %v39_v39  ;;  %175 = vmatpush1.msra.mxu1 %v41_v40  ;;  %v16_v61 = vld [vmem:[%s474_s1 + $0x8] sm:$0xff]  ;;  %v18_v62 = vld [vmem:[%s474_s1 + $0x18] sm:$0xff]  ;;  %v15_v63 = vld [vmem:[%s474_s1] sm:$0xff] }
  0x16   :  { %105 = vmatprep.subr.mxu0 %v36_v41  ;;  %176 = vmatprep.subr.mxu1 %v38_v42  ;;  %v17_v0 = vld [vmem:[%s474_s1 + $0x10] sm:$0xff]  ;;  %v14_v1 = vld [vmem:[%s475_s0] sm:$0xff] }
  0x17   :  { %106 = vmatpush1.msra.mxu0 %v35_v43  ;;  %177 = vmatpush1.msra.mxu1 %v37_v44  ;;  %v79_v2 = vld [vmem:[%s476_s2] sm:$0xff] }
  0x18   :  { %107 = vmatprep.subr.mxu0 %v32_v45  ;;  %178 = vmatprep.subr.mxu1 %v34_v46 }
  0x19   :  { %108 = vmatpush1.msra.mxu0 %v31_v47  ;;  %179 = vmatpush1.msra.mxu1 %v33_v48 }
  0x1a   :  { %109 = vmatprep.subr.mxu0 %v28_v49  ;;  %180 = vmatprep.subr.mxu1 %v30_v50 }
  0x1b   :  { %110 = vmatpush1.msra.mxu0 %v27_v51  ;;  %181 = vmatpush1.msra.mxu1 %v29_v52 }
  0x1c   :  { %111 = vmatprep.subr.mxu0 %v24_v53  ;;  %182 = vmatprep.subr.mxu1 %v26_v54 }
  0x1d   :  { %112 = vmatpush1.msra.mxu0 %v23_v55  ;;  %183 = vmatpush1.msra.mxu1 %v25_v56 }
  0x1e   :  { %113 = vmatprep.subr.mxu0 %v20_v57  ;;  %184 = vmatprep.subr.mxu1 %v22_v58 }
  0x1f   :  { %114 = vmatpush1.msra.mxu0 %v19_v59  ;;  %185 = vmatpush1.msra.mxu1 %v21_v60 }
  0x20   :  { %115 = vmatprep.subr.mxu0 %v16_v61  ;;  %186 = vmatprep.subr.mxu1 %v18_v62 }
  0x21   :  { %116 = vmatpush1.msra.mxu0 %v15_v63  ;;  %187 = vmatpush1.msra.mxu1 %v17_v0 }
  0x22   :  { %150 = vmatmul.mubr.f32.vlgmr.msra.gmra.mxu0 %v14_v1  ;;  %221 = vmatmul.mubr.f32.vlgmr.msra.gmra.mxu1 %v14_v1 }
  0x23   :  { %241 = vset.pattern.permute.xlu0 %v243_v3 }
  0x24   :  { %82 = vperm.xlu0 %241, %v79_v2  }
  0x9f   :  { %v83_v4 = vpop.permute.xlu0 %82 }
  0xe2   :  { %v151_v5 = vpop.f32.mrf.mxu0  ;;  %v222_v6 = vpop.f32.mrf.mxu1 }
  0xe3   :  { %v152_v7 = vadd.f32 %v151_v5, %v83_v4  ;;  %v223_v8 = vadd.f32 %v222_v6, %v83_v4 }
  0xe4   :  { %v153_v9 = vpop.f32.mrf.mxu0  ;;  %v224_v10 = vpop.f32.mrf.mxu1 }
  0xe5   :  { %v227_v11 = vmax.f32 %v152_v7, 0.0  ;;  %v229_v12 = vmax.f32 %v223_v8, 0.0  ;;  %v154_v13 = vadd.f32 %v153_v9, %v83_v4  ;;  %v225_v14 = vadd.f32 %v224_v10, %v83_v4 }
  0xe7   :  { %231 = vst [vmem:[%s477_s3] sm:$0xff] %v227_v11  ;;  %233 = vst [vmem:[%s477_s3 + $0x10] sm:$0xff] %v229_v12  ;;  %v228_v15 = vmax.f32 %v154_v13, 0.0  ;;  %v230_v16 = vmax.f32 %v225_v14, 0.0 }
  0xe9   :  { %232 = vst [vmem:[%s477_s3 + $0x8] sm:$0xff] %v228_v15  ;;  %234 = vst [vmem:[%s477_s3 + $0x18] sm:$0xff] %v230_v16 }

// kernel: lpnet_forward.12
= control target key start
LH: loop header
LB: loop body
LE: loop exit
PB: predicated region body
PF: predicated region fallthrough
CT: control target
= control target key end

     0   :  { %s70_s10 = smov 127   ;;  %s71_s13 = smov 126   ;;  %vm41_vm0 = vcmask 1046528   ;;  %vm51_vm1 = vcmask 1045504   ;;  %vm61_vm2 = vcmask 130048   ;;  %s97_s0 = inlined_call_operand.vmem [shape: f32[1,18,18], index: 0, kind: input, shape index: {}]   ;;  %s98_s1 = inlined_call_operand.vmem [shape: f32[1,16,16], index: 1, kind: output, shape index: {}]  }
   0x1   :  { %v10_v0 = vld [vmem:[%s97_s0 + $0x10] sm:$0x3]  ;;  %v8_v1 = vld [vmem:[%s97_s0] sm:$0xff]  ;;  %v9_v2 = vld [vmem:[%s97_s0 + $0x8] sm:$0xff] }
   0x2   :  { %18 = vrot.lane.b32.xlu1 %v10_v0, %s70_s10  ;;  %14 = vrot.lane.b32.xlu0 %v8_v1, %s70_s10 }
   0x6   :  { %26 = vrot.lane.b32.xlu1 %v8_v1, %s71_s13  ;;  %16 = vrot.lane.b32.xlu0 %v9_v2, %s70_s10 }
   0xa   :  { %30 = vrot.lane.b32.xlu1 %v10_v0, %s71_s13  ;;  %28 = vrot.lane.b32.xlu0 %v9_v2, %s71_s13 }
  0x74   :  { %v19_v3 = vpop.permute.xlu1 %18  ;;  %v15_v4 = vpop.permute.xlu0 %14 }
  0x75   :  { %v23_v5 = vmax.f32 %v8_v1, %v15_v4  ;;  %v25_v9 = vmax.f32 %v10_v0, %v19_v3 }
  0x78   :  { %v27_v6 = vpop.permute.xlu1 %26  ;;  %v17_v7 = vpop.permute.xlu0 %16 }
  0x79   :  { %v35_v8 = vmax.f32 %v23_v5, %v27_v6  ;;  %v24_v10 = vmax.f32 %v9_v2, %v17_v7 }
  0x7b   :  { %v42_v15 = vrot.slane %v35_v8, 1  ;;  %v52_v20 = vrot.slane %v35_v8, 2 }
  0x7c   :  { %v31_v11 = vpop.permute.xlu1 %30  ;;  %v29_v12 = vpop.permute.xlu0 %28 }
  0x7d   :  { %v37_v13 = vmax.f32 %v25_v9, %v31_v11  ;;  %v36_v14 = vmax.f32 %v24_v10, %v29_v12 }
  0x7f   :  { %v45_v16 = vrot.slane %v37_v13, 1  ;;  %v55_v17 = vrot.slane %v37_v13, 2  ;;  %v43_v18 = vrot.slane %v36_v14, 1  ;;  %v53_v19 = vrot.slane %v36_v14, 2 }
  0x81   :  { %v44_v21 = vsel %vm41_vm0, %v42_v15, %v43_v18  ;;  %v46_v22 = vsel %vm41_vm0, %v43_v18, %v45_v16  ;;  %v54_v25 = vsel %vm51_vm1, %v52_v20, %v53_v19  ;;  %v56_v26 = vsel %vm51_vm1, %v53_v19, %v55_v17 }
  0x82   :  { %v49_v23 = vmax.f32 %v35_v8, %v44_v21  ;;  %v50_v24 = vmax.f32 %v36_v14, %v46_v22 }
  0x84   :  { %v59_v27 = vmax.f32 %v49_v23, %v54_v25  ;;  %v60_v28 = vmax.f32 %v50_v24, %v56_v26 }
  0x86   :  { %62 = vst.msk [vmem:[%s98_s1] sm:$0xff] %vm61_vm2, %v59_v27  ;;  %63 = vst.msk [vmem:[%s98_s1 + $0x8] sm:$0xff] %vm61_vm2, %v60_v28 }

// kernel: lpnet_forward.13
= control target key start
LH: loop header
LB: loop body
LE: loop exit
PB: predicated region body
PF: predicated region fallthrough
CT: control target
= control target key end

     0   :  { %v61_v0 = vlaneseq  ;;  %v464_v4 = vmov 0.0   ;;  %vm465_vm0 = vmmov 0   ;;  %s755_s1 = inlined_call_operand.vmem [shape: f32[256,128], index: 1, kind: input, shape index: {}]   ;;  %s756_s0 = inlined_call_operand.vmem [shape: f32[1,256], index: 0, kind: input, shape index: {}]   ;;  %s757_s3 = inlined_call_operand.vmem [shape: f32[128,128], index: 3, kind: input, shape index: {}]   ;;  %s758_s5 = inlined_call_operand.vmem [shape: f32[128,128], index: 5, kind: input, shape index: {}]   ;;  %s759_s2 = inlined_call_operand.vmem [shape: f32[1,128], index: 2, kind: input, shape index: {}]   ;;  %s760_s4 = inlined_call_operand.vmem [shape: f32[1,128], index: 4, kind: input, shape index: {}]   ;;  %s761_s6 = inlined_call_operand.vmem [shape: f32[1,128], index: 6, kind: input, shape index: {}]   ;;  %s762_s7 = inlined_call_operand.vmem [shape: f32[1,128], index: 7, kind: output, shape index: {}]  }
   0x1   :  { %v58_v1 = vld [vmem:[%s755_s1 + $0xf8] sm:$0xff]  ;;  %v57_v3 = vld [vmem:[%s755_s1 + $0xf0] sm:$0xff]  ;;  %392 = vmatprep.subr.mxu1 %v464_v4  ;;  %v56_v6 = vld [vmem:[%s755_s1 + $0xe8] sm:$0xff]  ;;  %424 = vmatprep.mubr.msk.f32.mxu1 %vm465_vm0, %v464_v4 }
   0x2   :  { %v42_v2 = vld [vmem:[%s755_s1 + $0x78] sm:$0xff]  ;;  %323 = vmatprep.subr.mxu0 %v58_v1  ;;  %v41_v5 = vld [vmem:[%s755_s1 + $0x70] sm:$0xff]  ;;  %v40_v7 = vld [vmem:[%s755_s1 + $0x68] sm:$0xff]  ;;  %v525_v8 = vshrl.u32 %v61_v0, 7 }
   0x3   :  { %324 = vmatpush3.msra.mxu0 %v42_v2  ;;  %v55_v9 = vld [vmem:[%s755_s1 + $0xe0] sm:$0xff]  ;;  %v54_v11 = vld [vmem:[%s755_s1 + $0xd8] sm:$0xff]  ;;  %v53_v14 = vld [vmem:[%s755_s1 + $0xd0] sm:$0xff] }
   0x4   :  { %325 = vmatprep.subr.mxu0 %v57_v3  ;;  %v39_v10 = vld [vmem:[%s755_s1 + $0x60] sm:$0xff]  ;;  %v38_v12 = vld [vmem:[%s755_s1 + $0x58] sm:$0xff]  ;;  %v67_v13 = vsub.s32 1, %v525_v8  ;;  %v37_v15 = vld [vmem:[%s755_s1 + $0x50] sm:$0xff]  ;;  %v63_v42 = vsub.s32 0, %v525_v8 }
   0x5   :  { %326 = vmatpush3.msra.mxu0 %v41_v5  ;;  %v52_v16 = vld [vmem:[%s755_s1 + $0xc8] sm:$0xff]  ;;  %v552_v17 = vld [vmem:[%s756_s0] sm:$0x3]  ;;  %v157_v20 = vld [vmem:[%s757_s3 + $0x78] sm:$0xff] }
   0x6   :  { %327 = vmatprep.subr.mxu0 %v56_v6  ;;  %v36_v18 = vld [vmem:[%s755_s1 + $0x48] sm:$0xff]  ;;  %v68_v19 = vrot.slane %v552_v17, %v67_v13  ;;  %v51_v21 = vld [vmem:[%s755_s1 + $0xc0] sm:$0xff]  ;;  %393 = vmatpush3.msra.mxu1 %v157_v20  ;;  %v156_v22 = vld [vmem:[%s757_s3 + $0x70] sm:$0xff]  ;;  %v64_v49 = vrot.slane %v552_v17, %v63_v42 }
   0x7   :  { %328 = vmatpush3.msra.mxu0 %v40_v7  ;;  %v35_v23 = vld [vmem:[%s755_s1 + $0x40] sm:$0xff]  ;;  %v50_v24 = vld [vmem:[%s755_s1 + $0xb8] sm:$0xff]  ;;  %394 = vmatprep.subr.mxu1 %v464_v4  ;;  %v155_v25 = vld [vmem:[%s757_s3 + $0x68] sm:$0xff] }
   0x8   :  { %329 = vmatprep.subr.mxu0 %v55_v9  ;;  %135 = vmatprep.mubr.f32.mxu0 %v68_v19  ;;  %v34_v26 = vld [vmem:[%s755_s1 + $0x38] sm:$0xff]  ;;  %v49_v27 = vld [vmem:[%s755_s1 + $0xb0] sm:$0xff]  ;;  %v154_v28 = vld [vmem:[%s757_s3 + $0x60] sm:$0xff] }
   0x9   :  { %330 = vmatpush3.msra.mxu0 %v39_v10  ;;  %395 = vmatpush3.msra.mxu1 %v156_v22  ;;  %v33_v29 = vld [vmem:[%s755_s1 + $0x30] sm:$0xff]  ;;  %v48_v30 = vld [vmem:[%s755_s1 + $0xa8] sm:$0xff]  ;;  %v153_v31 = vld [vmem:[%s757_s3 + $0x58] sm:$0xff] }
   0xa   :  { %331 = vmatprep.subr.mxu0 %v54_v11  ;;  %396 = vmatprep.subr.mxu1 %v464_v4  ;;  %v32_v32 = vld [vmem:[%s755_s1 + $0x28] sm:$0xff]  ;;  %v47_v33 = vld [vmem:[%s755_s1 + $0xa0] sm:$0xff]  ;;  %v152_v34 = vld [vmem:[%s757_s3 + $0x50] sm:$0xff] }
   0xb   :  { %332 = vmatpush3.msra.mxu0 %v38_v12  ;;  %397 = vmatpush3.msra.mxu1 %v155_v25  ;;  %v31_v35 = vld [vmem:[%s755_s1 + $0x20] sm:$0xff]  ;;  %v46_v36 = vld [vmem:[%s755_s1 + $0x98] sm:$0xff]  ;;  %v151_v37 = vld [vmem:[%s757_s3 + $0x48] sm:$0xff] }
   0xc   :  { %333 = vmatprep.subr.mxu0 %v53_v14  ;;  %398 = vmatprep.subr.mxu1 %v464_v4  ;;  %v30_v38 = vld [vmem:[%s755_s1 + $0x18] sm:$0xff]  ;;  %v45_v39 = vld [vmem:[%s755_s1 + $0x90] sm:$0xff]  ;;  %v150_v40 = vld [vmem:[%s757_s3 + $0x40] sm:$0xff] }
   0xd   :  { %334 = vmatpush3.msra.mxu0 %v37_v15  ;;  %399 = vmatpush3.msra.mxu1 %v154_v28  ;;  %v29_v41 = vld [vmem:[%s755_s1 + $0x10] sm:$0xff]  ;;  %v44_v43 = vld [vmem:[%s755_s1 + $0x88] sm:$0xff]  ;;  %v149_v44 = vld [vmem:[%s757_s3 + $0x38] sm:$0xff] }
   0xe   :  { %335 = vmatprep.subr.mxu0 %v52_v16  ;;  %400 = vmatprep.subr.mxu1 %v464_v4  ;;  %v28_v45 = vld [vmem:[%s755_s1 + $0x8] sm:$0xff]  ;;  %v43_v46 = vld [vmem:[%s755_s1 + $0x80] sm:$0xff]  ;;  %v148_v47 = vld [vmem:[%s757_s3 + $0x30] sm:$0xff] }
   0xf   :  { %336 = vmatpush3.msra.mxu0 %v36_v18  ;;  %401 = vmatpush3.msra.mxu1 %v153_v31  ;;  %v27_v48 = vld [vmem:[%s755_s1] sm:$0xff]  ;;  %v147_v50 = vld [vmem:[%s757_s3 + $0x28] sm:$0xff]  ;;  %v145_v52 = vld [vmem:[%s757_s3 + $0x18] sm:$0xff] }
  0x10   :  { %337 = vmatprep.subr.mxu0 %v51_v21  ;;  %402 = vmatprep.subr.mxu1 %v464_v4  ;;  %v146_v51 = vld [vmem:[%s757_s3 + $0x20] sm:$0xff]  ;;  %v144_v53 = vld [vmem:[%s757_s3 + $0x10] sm:$0xff]  ;;  %v143_v54 = vld [vmem:[%s757_s3 + $0x8] sm:$0xff] }
  0x11   :  { %338 = vmatpush3.msra.mxu0 %v35_v23  ;;  %403 = vmatpush3.msra.mxu1 %v152_v34  ;;  %v142_v55 = vld [vmem:[%s757_s3] sm:$0xff]  ;;  %v245_v56 = vld [vmem:[%s758_s5 + $0x78] sm:$0xff]  ;;  %v244_v57 = vld [vmem:[%s758_s5 + $0x70] sm:$0xff] }
  0x12   :  { %339 = vmatprep.subr.mxu0 %v50_v24  ;;  %404 = vmatprep.subr.mxu1 %v464_v4  ;;  %v243_v58 = vld [vmem:[%s758_s5 + $0x68] sm:$0xff]  ;;  %v242_v59 = vld [vmem:[%s758_s5 + $0x60] sm:$0xff]  ;;  %v241_v60 = vld [vmem:[%s758_s5 + $0x58] sm:$0xff] }
  0x13   :  { %340 = vmatpush3.msra.mxu0 %v34_v26  ;;  %405 = vmatpush3.msra.mxu1 %v151_v37  ;;  %v240_v61 = vld [vmem:[%s758_s5 + $0x50] sm:$0xff]  ;;  %v239_v62 = vld [vmem:[%s758_s5 + $0x48] sm:$0xff]  ;;  %v238_v63 = vld [vmem:[%s758_s5 + $0x40] sm:$0xff] }
  0x14   :  { %341 = vmatprep.subr.mxu0 %v49_v27  ;;  %406 = vmatprep.subr.mxu1 %v464_v4  ;;  %v237_v0 = vld [vmem:[%s758_s5 + $0x38] sm:$0xff]  ;;  %v236_v1 = vld [vmem:[%s758_s5 + $0x30] sm:$0xff]  ;;  %v235_v2 = vld [vmem:[%s758_s5 + $0x28] sm:$0xff] }
  0x15   :  { %342 = vmatpush3.msra.mxu0 %v33_v29  ;;  %407 = vmatpush3.msra.mxu1 %v150_v40  ;;  %v234_v3 = vld [vmem:[%s758_s5 + $0x20] sm:$0xff]  ;;  %v233_v5 = vld [vmem:[%s758_s5 + $0x18] sm:$0xff]  ;;  %v232_v12 = vld [vmem:[%s758_s5 + $0x10] sm:$0xff] }
  0x16   :  { %343 = vmatprep.subr.mxu0 %v48_v30  ;;  %408 = vmatprep.subr.mxu1 %v464_v4  ;;  %v59_v7 = vld [vmem:[%s759_s2] sm:$0x1]  ;;  %v231_v13 = vld [vmem:[%s758_s5 + $0x8] sm:$0xff] }
  0x17   :  { %344 = vmatpush3.msra.mxu0 %v32_v32  ;;  %409 = vmatpush3.msra.mxu1 %v149_v44  ;;  %v230_v14 = vld [vmem:[%s758_s5] sm:$0xff] }
  0x18   :  { %345 = vmatprep.subr.mxu0 %v47_v33  ;;  %410 = vmatprep.subr.mxu1 %v464_v4  ;;  %v158_v15 = vld [vmem:[%s760_s4] sm:$0x1] }
  0x19   :  { %346 = vmatpush3.msra.mxu0 %v31_v35  ;;  %411 = vmatpush3.msra.mxu1 %v148_v47  ;;  %v246_v20 = vld [vmem:[%s761_s6] sm:$0x1] }
  0x1a   :  { %347 = vmatprep.subr.mxu0 %v46_v36  ;;  %412 = vmatprep.subr.mxu1 %v464_v4 }
  0x1b   :  { %348 = vmatpush3.msra.mxu0 %v30_v38  ;;  %413 = vmatpush3.msra.mxu1 %v147_v50 }
  0x1c   :  { %349 = vmatprep.subr.mxu0 %v45_v39  ;;  %414 = vmatprep.subr.mxu1 %v464_v4 }
  0x1d   :  { %350 = vmatpush3.msra.mxu0 %v29_v41  ;;  %415 = vmatpush3.msra.mxu1 %v146_v51 }
  0x1e   :  { %351 = vmatprep.subr.mxu0 %v44_v43  ;;  %416 = vmatprep.subr.mxu1 %v464_v4 }
  0x1f   :  { %352 = vmatpush3.msra.mxu0 %v28_v45  ;;  %417 = vmatpush3.msra.mxu1 %v145_v52 }
  0x20   :  { %353 = vmatprep.subr.mxu0 %v43_v46  ;;  %418 = vmatprep.subr.mxu1 %v464_v4 }
  0x21   :  { %354 = vmatpush3.msra.mxu0 %v27_v48  ;;  %419 = vmatpush3.msra.mxu1 %v144_v53 }
  0x22   :  { %136 = vmatmul.mubr.f32.vlgmr.msra.gmra.mxu0 %v64_v49  ;;  %427 = vmatprep.subr.mxu0 %v464_v4 }
  0x23   :  { %420 = vmatprep.subr.mxu1 %v464_v4  ;;  %459 = vmatprep.mubr.msk.f32.mxu0 %vm465_vm0, %v464_v4 }
  0x24   :  { %421 = vmatpush3.msra.mxu1 %v143_v54  ;;  %428 = vmatpush3.msra.mxu0 %v245_v56 }
  0x25   :  { %422 = vmatprep.subr.mxu1 %v464_v4  ;;  %429 = vmatprep.subr.mxu0 %v464_v4 }
  0x26   :  { %423 = vmatpush3.msra.mxu1 %v142_v55  ;;  %430 = vmatpush3.msra.mxu0 %v244_v57 }
  0x27   :  { %431 = vmatprep.subr.mxu0 %v464_v4 }
  0x28   :  { %432 = vmatpush3.msra.mxu0 %v243_v58 }
  0x29   :  { %433 = vmatprep.subr.mxu0 %v464_v4 }
  0x2a   :  { %434 = vmatpush3.msra.mxu0 %v242_v59 }
  0x2b   :  { %435 = vmatprep.subr.mxu0 %v464_v4 }
  0x2c   :  { %436 = vmatpush3.msra.mxu0 %v241_v60 }
  0x2d   :  { %437 = vmatprep.subr.mxu0 %v464_v4 }
  0x2e   :  { %438 = vmatpush3.msra.mxu0 %v240_v61 }
  0x2f   :  { %439 = vmatprep.subr.mxu0 %v464_v4 }
  0x30   :  { %440 = vmatpush3.msra.mxu0 %v239_v62 }
  0x31   :  { %441 = vmatprep.subr.mxu0 %v464_v4 }
  0x32   :  { %442 = vmatpush3.msra.mxu0 %v238_v63 }
  0x33   :  { %443 = vmatprep.subr.mxu0 %v464_v4 }
  0x34   :  { %444 = vmatpush3.msra.mxu0 %v237_v0 }
  0x35   :  { %445 = vmatprep.subr.mxu0 %v464_v4 }
  0x36   :  { %446 = vmatpush3.msra.mxu0 %v236_v1 }
  0x37   :  { %447 = vmatprep.subr.mxu0 %v464_v4 }
  0x38   :  { %448 = vmatpush3.msra.mxu0 %v235_v2 }
  0x39   :  { %449 = vmatprep.subr.mxu0 %v464_v4 }
  0x3a   :  { %450 = vmatpush3.msra.mxu0 %v234_v3 }
  0x3b   :  { %451 = vmatprep.subr.mxu0 %v464_v4 }
  0x3c   :  { %452 = vmatpush3.msra.mxu0 %v233_v5 }
  0x3d   :  { %453 = vmatprep.subr.mxu0 %v464_v4 }
  0x3e   :  { %454 = vmatpush3.msra.mxu0 %v232_v12 }
  0x3f   :  { %455 = vmatprep.subr.mxu0 %v464_v4 }
  0x40   :  { %456 = vmatpush3.msra.mxu0 %v231_v13 }
  0x41   :  { %457 = vmatprep.subr.mxu0 %v464_v4 }
  0x42   :  { %458 = vmatpush3.msra.mxu0 %v230_v14 }
  0xe2   :  { %v355_v6 = vpop.f32.mrf.mxu0 }
  0xe4   :  { %v356_v8 = vpop.f32.mrf.mxu0 }
  0xe5   :  { %v357_v9 = vadd.f32 %v356_v8, %v355_v6 }
  0xe7   :  { %v138_v10 = vadd.f32 %v357_v9, %v59_v7 }
  0xe9   :  { %v141_v11 = vmax.f32 %v138_v10, 0.0 }
  0xeb   :  { %425 = vmatmul.mubr.f32.vlgmr.msra.gmra.mxu1 %v141_v11 }
 0x1ab   :  { %v225_v16 = vpop.f32.mrf.mxu1 }
 0x1ac   :  { %v226_v17 = vadd.f32 %v225_v16, %v158_v15 }
 0x1ad   :  { %v426_v18 = vpop.f32.mrf.mxu1 }
 0x1ae   :  { %v229_v19 = vmax.f32 %v226_v17, 0.0 }
 0x1b0   :  { %460 = vmatmul.mubr.f32.vlgmr.msra.gmra.mxu0 %v229_v19 }
 0x270   :  { %v313_v21 = vpop.f32.mrf.mxu0 }
 0x271   :  { %v314_v4 = vadd.f32 %v313_v21, %v246_v20 }
 0x272   :  { %v461_v22 = vpop.f32.mrf.mxu0 }
 0x273   :  { %v317_v23 = vmax.f32 %v314_v4, 0.0 }
 0x275   :  { %318 = vst [vmem:[%s762_s7] sm:$0x1] %v317_v23 }

</bundles_post_ra>
